<compile_context>
chip_gen: v6e
topology: v6e:2x2x1
jax: 0.10.0
libtpu: 0.0.40
codegen_flags: <defaults>
</compile_context>

<pallas_src>
import numpy as np
import jax
import jax.numpy as jnp
from jax import lax
from jax.experimental import pallas as pl
from jax.experimental.pallas import tpu as pltpu

_H = 32
_W = 32
_HW = _H * _W            # 1024 lanes: dense 32x32 grid, row-major p = 32*y + x
_C1 = 8                  # conv1 out channels
_C2 = 16                 # conv2 out channels
_PH = 16                 # post-maxpool grid (16x16), sparse on lanes p = 64*yo + 2*xo
_AH = 8                  # post-avgpool grid (8x8)
_K1 = 16                 # padded conv1 contraction: 9 taps + 1 bias row + 6 zero rows
_K2 = 80                 # padded conv2 contraction: 72 taps + 1 bias row + 7 zero rows


def _fcnn_fused_kernel(x_ref, r_ref, p_ref, o_ref, col1_ref, col2_ref):
    f32 = jnp.float32
    x = x_ref[...]                                        # (1, 1024) lane-dense image
    lane = lax.broadcasted_iota(jnp.int32, (1, _HW), 1)   # (1, 1024) lane index
    ones_row = jnp.ones((1, _HW), f32)

    def fmask(dy, dx, yi, xi, ylim, xlim):
        """Zero-padding mask for tap (dy, dx) as a (1, 1024) float 0/1; None = all valid."""
        conds = []
        if dy == -1:
            conds.append(yi >= 1)
        elif dy == 1:
            conds.append(yi <= ylim - 2)
        if dx == -1:
            conds.append(xi >= 1)
        elif dx == 1:
            conds.append(xi <= xlim - 2)
        if not conds:
            return None
        m = conds[0]
        for c in conds[1:]:
            m = jnp.logical_and(m, c)
        return jnp.where(m, jnp.float32(1.0), jnp.float32(0.0))

    # ---- conv1 (Cin=1) + bias + ReLU on the MXU: 9 rolled/masked (1,1024) taps
    #      plus a ones row (bias) stored into col1, one (8,16)@(16,1024) matmul. ----
    y1 = lane >> 5                                        # p // 32
    x1 = lane & 31                                        # p % 32
    t = 0
    for dy in (-1, 0, 1):
        for dx in (-1, 0, 1):
            s = _W * dy + dx                              # source lane offset of tap
            src = x if s == 0 else pltpu.roll(x, (-s) % _HW, 1)
            m = fmask(dy, dx, y1, x1, _H, _W)
            col1_ref[t:t + 1, :] = src if m is None else src * m
            t += 1
    col1_ref[9:10, :] = ones_row                          # bias row
    col1_ref[10:_K1, :] = jnp.zeros((_K1 - 10, _HW), f32)  # keep pad rows finite
    w1e = p_ref[16:24, 0:_K1]                             # (8, 16) = [taps | b1 | 0]
    c1 = jnp.maximum(jnp.dot(w1e, col1_ref[...], preferred_element_type=f32), 0.0)

    # ---- 2x2 maxpool stride 2 via roll+max; valid results live on the sparse
    #      lanes p = 64*yo + 2*xo (yo, xo in [0,16)); other lanes hold unused
    #      finite values that never feed back into valid lanes. ----
    m01 = jnp.maximum(c1, pltpu.roll(c1, _HW - 1, 1))     # max over x pair
    mp = jnp.maximum(m01, pltpu.roll(m01, _HW - _W, 1))   # max over y pair

    # ---- conv2 (Cin=8, Cout=16) + bias + ReLU, still in sparse lane space:
    #      build the (72+1, 1024) im2col slab (incl. ones/bias row), one matmul. ----
    yo = lane >> 6                                        # p // 64
    xo = (lane & 63) >> 1                                 # (p % 64) // 2
    t = 0
    for dy in (-1, 0, 1):
        for dx in (-1, 0, 1):
            s = 2 * _W * dy + 2 * dx                      # neighbor offset in sparse lanes
            src = mp if s == 0 else pltpu.roll(mp, (-s) % _HW, 1)
            m = fmask(dy, dx, yo, xo, _PH, _PH)           # (1,1024), broadcast over 8 chans
            col2_ref[8 * t:8 * (t + 1), :] = src if m is None else src * m
            t += 1
    col2_ref[72:73, :] = ones_row                         # bias row
    col2_ref[73:_K2, :] = jnp.zeros((_K2 - 73, _HW), f32)  # keep pad rows finite
    w2e = p_ref[0:16, 0:_K2]                              # (16, 80) = [taps | b2 | 0]
    c2 = jnp.maximum(jnp.dot(w2e, col2_ref[...], preferred_element_type=f32), 0.0)

    # ---- fused avgpool + flatten + fc1 + fc2:  out = sum(c2 * R) + b_eff ----
    part = jnp.sum(c2 * r_ref[...], axis=1, keepdims=True)     # (16, 1)
    o_ref[...] = jnp.sum(part, axis=0, keepdims=True) + p_ref[24:25, 0:1]


# ----------------------------------------------------------------------------
# One-time parameter repacking (all folds / transposes happen here, host-side)
# ----------------------------------------------------------------------------
def _avgpool_matrix():
    """(1024, 64) matrix folding 2x2 avg-pool + sparse-lane compaction.

    Row p = 64*yo + 2*xo (post-maxpool sparse lane), col a = 8*(yo//2) + xo//2,
    value 0.25 for the four lanes of each pooling window.
    """
    A = np.zeros((_HW, _AH * _AH), np.float32)
    yo, xo = np.meshgrid(np.arange(_PH), np.arange(_PH), indexing="ij")
    p = (2 * _W * yo + 2 * xo).reshape(-1)
    a = (_AH * (yo // 2) + xo // 2).reshape(-1)
    A[p, a] = 0.25
    return A


def prepare_params(params):
    """Repack PyTorch-layout parameters into the two kernel operands (done once)."""
    w1 = np.asarray(params["w1"], np.float32)          # (8, 1, 3, 3)
    b1 = np.asarray(params["b1"], np.float32)          # (8,)
    w2 = np.asarray(params["w2"], np.float32)          # (16, 8, 3, 3)
    b2 = np.asarray(params["b2"], np.float32)          # (16,)
    fc1_w = np.asarray(params["fc1_w"], np.float32)    # (16, 1024)
    fc1_b = np.asarray(params["fc1_b"], np.float32)    # (16,)
    fc2_w = np.asarray(params["fc2_w"], np.float32)    # (1, 16)
    fc2_b = np.asarray(params["fc2_b"], np.float32)    # (1,)

    # fc fold: no ReLU between fc1 and fc2 => fc2(fc1(pool(v))) is linear in c2.
    M = (fc2_w @ fc1_w).reshape(_C2, _AH * _AH)        # (16, 64); M[c, a] = (fc2@fc1)[c*64+a]
    R = M @ _avgpool_matrix().T                        # (16, 1024), zero on invalid lanes
    b_eff = (fc2_w @ fc1_b + fc2_b).item()

    # Packed small-parameter slab (one DMA for all remaining weights/biases).
    P = np.zeros((32, 128), np.float32)
    P[0:_C2, 0:72] = np.transpose(w2, (0, 2, 3, 1)).reshape(_C2, 72)  # [o, 8*(3*ky+kx)+cin]
    P[0:_C2, 72] = b2
    P[16:24, 0:9] = w1.reshape(_C1, 9)                                # [o, 3*ky+kx]
    P[16:24, 9] = b1
    P[24, 0] = b_eff
    return {"R": jnp.asarray(R), "P": jnp.asarray(P)}


# ----------------------------------------------------------------------------
# Forward pass: one fused pallas_call, 3 input DMAs (image, R, packed slab)
# ----------------------------------------------------------------------------
def fcnn_forward(kparams, x_nchw):
    N, C, H, W = x_nchw.shape
    assert N == 1 and C == 1 and H == _H and W == _W, \
        "torch.flatten before fc1 requires batch=1; adaptive pool specialized to 32x32"
    x2d = x_nchw.reshape(1, _HW)
    out = pl.pallas_call(
        _fcnn_fused_kernel,
        out_shape=jax.ShapeDtypeStruct((1, 1), jnp.float32),
        scratch_shapes=[pltpu.VMEM((_K1, _HW), jnp.float32),   # conv1 im2col (+bias) slab
                        pltpu.VMEM((_K2, _HW), jnp.float32)],  # conv2 im2col (+bias) slab
    )(x2d, kparams["R"], kparams["P"])
    return out.reshape(1)                                      # matches torch output shape


# ----------------------------------------------------------------------------
# Pure-JAX reference (mirrors the PyTorch module) for a self-check
# ----------------------------------------------------------------------------
def fcnn_reference(params, x_nchw):
    y = lax.conv_general_dilated(
        x_nchw, params["w1"], window_strides=(1, 1), padding=((1, 1), (1, 1)),
        dimension_numbers=("NCHW", "OIHW", "NCHW"))
    y = jnp.maximum(y + params["b1"].reshape(1, _C1, 1, 1), 0.0)
    y = lax.reduce_window(y, -jnp.inf, lax.max, (1, 1, 2, 2), (1, 1, 2, 2), "VALID")
    y = lax.conv_general_dilated(
        y, params["w2"], window_strides=(1, 1), padding=((1, 1), (1, 1)),
        dimension_numbers=("NCHW", "OIHW", "NCHW"))
    y = jnp.maximum(y + params["b2"].reshape(1, _C2, 1, 1), 0.0)
    y = y.reshape(1, _C2, _AH, 2, _AH, 2).mean(axis=(3, 5))    # AdaptiveAvgPool2d((8,8))
    v = y.reshape(-1)                                          # (C, H, W) flatten order
    h = params["fc1_w"] @ v + params["fc1_b"]
    return params["fc2_w"] @ h + params["fc2_b"]


# ----------------------------------------------------------------------------
# Deterministic parameter init (PyTorch default Kaiming-uniform style bounds)
# ----------------------------------------------------------------------------
def init_params(key):
    ks = jax.random.split(key, 8)

    def u(k, shape, fan_in):
        bound = 1.0 / float(fan_in) ** 0.5
        return jax.random.uniform(k, shape, jnp.float32, -bound, bound)

    return {
        "w1": u(ks[0], (8, 1, 3, 3), 1 * 9),
        "b1": u(ks[1], (8,), 1 * 9),
        "w2": u(ks[2], (16, 8, 3, 3), 8 * 9),
        "b2": u(ks[3], (16,), 8 * 9),
        "fc1_w": u(ks[4], (16, 1024), 1024),   # torch Linear weight: (out, in)
        "fc1_b": u(ks[5], (16,), 1024),
        "fc2_w": u(ks[6], (1, 16), 16),
        "fc2_b": u(ks[7], (1,), 16),
    }


if __name__ == "__main__":
    key = jax.random.PRNGKey(0)
    pkey, xkey = jax.random.split(key)
    params = init_params(pkey)
    kparams = prepare_params(params)
    x = jax.random.normal(xkey, (1, 1, 32, 32), jnp.float32)

    fwd = jax.jit(fcnn_forward)
    out = fwd(kparams, x)
    jax.block_until_ready(out)

    ref = fcnn_reference(params, x)
    np.testing.assert_allclose(np.asarray(out), np.asarray(ref), rtol=1e-3, atol=1e-4)

    assert out.shape == (1,) and out.dtype == jnp.float32
    print("KERNEL_OK")
</pallas_src>

<mosaic_0001>
module attributes {stable_mosaic.version = 11 : i64} {
  func.func @_fcnn_fused_kernel(%arg0: memref<1x1024xf32, #tpu.memory_space<vmem>>, %arg1: memref<16x1024xf32, #tpu.memory_space<vmem>>, %arg2: memref<32x128xf32, #tpu.memory_space<vmem>>, %arg3: memref<1x1xf32, #tpu.memory_space<vmem>>, %arg4: memref<16x1024xf32, #tpu.memory_space<vmem>>, %arg5: memref<80x1024xf32, #tpu.memory_space<vmem>>) attributes {dimension_semantics = [], scalar_prefetch = 0 : i64, scratch_operands = 2 : i64, tpu.core_type = #tpu.core_type<tc>} {
    %c0 = arith.constant 0 : index
    %c0_0 = arith.constant 0 : index
    %0 = vector.load %arg0[%c0, %c0_0] : memref<1x1024xf32, #tpu.memory_space<vmem>>, vector<1x1024xf32>
    %1 = tpu.iota {dimensions = array<i32: 1>} : vector<1x1024xi32>
    %cst = arith.constant 1.000000e+00 : f32
    %2 = vector.broadcast %cst : f32 to vector<1x1024xf32>
    %c5_i32 = arith.constant 5 : i32
    %3 = vector.broadcast %c5_i32 : i32 to vector<1x1024xi32>
    %4 = arith.shrsi %1, %3 : vector<1x1024xi32>
    %c31_i32 = arith.constant 31 : i32
    %5 = vector.broadcast %c31_i32 : i32 to vector<1x1024xi32>
    %6 = arith.andi %1, %5 : vector<1x1024xi32>
    %c33_i32 = arith.constant 33 : i32
    %7 = tpu.dynamic_rotate %0 by %c33_i32 dim 1 : vector<1x1024xf32>, i32 -> vector<1x1024xf32>
    %c1_i32 = arith.constant 1 : i32
    %8 = vector.broadcast %c1_i32 : i32 to vector<1x1024xi32>
    %9 = arith.cmpi sge, %4, %8 : vector<1x1024xi32>
    %c1_i32_1 = arith.constant 1 : i32
    %10 = vector.broadcast %c1_i32_1 : i32 to vector<1x1024xi32>
    %11 = arith.cmpi sge, %6, %10 : vector<1x1024xi32>
    %12 = arith.andi %9, %11 : vector<1x1024xi1>
    %cst_2 = arith.constant 1.000000e+00 : f32
    %cst_3 = arith.constant 0.000000e+00 : f32
    %13 = vector.broadcast %cst_2 : f32 to vector<1x1024xf32>
    %14 = vector.broadcast %cst_3 : f32 to vector<1x1024xf32>
    %15 = arith.select %12, %13, %14 : vector<1x1024xi1>, vector<1x1024xf32>
    %16 = arith.mulf %7, %15 : vector<1x1024xf32>
    %c0_4 = arith.constant 0 : index
    %c0_5 = arith.constant 0 : index
    %17 = vector.load %arg4[%c0_4, %c0_5] : memref<16x1024xf32, #tpu.memory_space<vmem>>, vector<1x1024xf32>
    tpu.vector_store %arg4[%c0_4, %c0_5], %16 {strides = array<i32>} : memref<16x1024xf32, #tpu.memory_space<vmem>>, vector<1x1024xf32>,
    %c32_i32 = arith.constant 32 : i32
    %18 = tpu.dynamic_rotate %0 by %c32_i32 dim 1 : vector<1x1024xf32>, i32 -> vector<1x1024xf32>
    %c1_i32_6 = arith.constant 1 : i32
    %19 = vector.broadcast %c1_i32_6 : i32 to vector<1x1024xi32>
    %20 = arith.cmpi sge, %4, %19 : vector<1x1024xi32>
    %cst_7 = arith.constant 1.000000e+00 : f32
    %cst_8 = arith.constant 0.000000e+00 : f32
    %21 = vector.broadcast %cst_7 : f32 to vector<1x1024xf32>
    %22 = vector.broadcast %cst_8 : f32 to vector<1x1024xf32>
    %23 = arith.select %20, %21, %22 : vector<1x1024xi1>, vector<1x1024xf32>
    %24 = arith.mulf %18, %23 : vector<1x1024xf32>
    %c1 = arith.constant 1 : index
    %c0_9 = arith.constant 0 : index
    %25 = vector.load %arg4[%c1, %c0_9] : memref<16x1024xf32, #tpu.memory_space<vmem>>, vector<1x1024xf32>
    tpu.vector_store %arg4[%c1, %c0_9], %24 {strides = array<i32>} : memref<16x1024xf32, #tpu.memory_space<vmem>>, vector<1x1024xf32>,
    %c31_i32_10 = arith.constant 31 : i32
    %26 = tpu.dynamic_rotate %0 by %c31_i32_10 dim 1 : vector<1x1024xf32>, i32 -> vector<1x1024xf32>
    %c1_i32_11 = arith.constant 1 : i32
    %27 = vector.broadcast %c1_i32_11 : i32 to vector<1x1024xi32>
    %28 = arith.cmpi sge, %4, %27 : vector<1x1024xi32>
    %c30_i32 = arith.constant 30 : i32
    %29 = vector.broadcast %c30_i32 : i32 to vector<1x1024xi32>
    %30 = arith.cmpi sle, %6, %29 : vector<1x1024xi32>
    %31 = arith.andi %28, %30 : vector<1x1024xi1>
    %cst_12 = arith.constant 1.000000e+00 : f32
    %cst_13 = arith.constant 0.000000e+00 : f32
    %32 = vector.broadcast %cst_12 : f32 to vector<1x1024xf32>
    %33 = vector.broadcast %cst_13 : f32 to vector<1x1024xf32>
    %34 = arith.select %31, %32, %33 : vector<1x1024xi1>, vector<1x1024xf32>
    %35 = arith.mulf %26, %34 : vector<1x1024xf32>
    %c2 = arith.constant 2 : index
    %c0_14 = arith.constant 0 : index
    %36 = vector.load %arg4[%c2, %c0_14] : memref<16x1024xf32, #tpu.memory_space<vmem>>, vector<1x1024xf32>
    tpu.vector_store %arg4[%c2, %c0_14], %35 {strides = array<i32>} : memref<16x1024xf32, #tpu.memory_space<vmem>>, vector<1x1024xf32>,
    %c1_i32_15 = arith.constant 1 : i32
    %37 = tpu.dynamic_rotate %0 by %c1_i32_15 dim 1 : vector<1x1024xf32>, i32 -> vector<1x1024xf32>
    %c1_i32_16 = arith.constant 1 : i32
    %38 = vector.broadcast %c1_i32_16 : i32 to vector<1x1024xi32>
    %39 = arith.cmpi sge, %6, %38 : vector<1x1024xi32>
    %cst_17 = arith.constant 1.000000e+00 : f32
    %cst_18 = arith.constant 0.000000e+00 : f32
    %40 = vector.broadcast %cst_17 : f32 to vector<1x1024xf32>
    %41 = vector.broadcast %cst_18 : f32 to vector<1x1024xf32>
    %42 = arith.select %39, %40, %41 : vector<1x1024xi1>, vector<1x1024xf32>
    %43 = arith.mulf %37, %42 : vector<1x1024xf32>
    %c3 = arith.constant 3 : index
    %c0_19 = arith.constant 0 : index
    %44 = vector.load %arg4[%c3, %c0_19] : memref<16x1024xf32, #tpu.memory_space<vmem>>, vector<1x1024xf32>
    tpu.vector_store %arg4[%c3, %c0_19], %43 {strides = array<i32>} : memref<16x1024xf32, #tpu.memory_space<vmem>>, vector<1x1024xf32>,
    %c4 = arith.constant 4 : index
    %c0_20 = arith.constant 0 : index
    %45 = vector.load %arg4[%c4, %c0_20] : memref<16x1024xf32, #tpu.memory_space<vmem>>, vector<1x1024xf32>
    tpu.vector_store %arg4[%c4, %c0_20], %0 {strides = array<i32>} : memref<16x1024xf32, #tpu.memory_space<vmem>>, vector<1x1024xf32>,
    %c1023_i32 = arith.constant 1023 : i32
    %46 = tpu.dynamic_rotate %0 by %c1023_i32 dim 1 : vector<1x1024xf32>, i32 -> vector<1x1024xf32>
    %c30_i32_21 = arith.constant 30 : i32
    %47 = vector.broadcast %c30_i32_21 : i32 to vector<1x1024xi32>
    %48 = arith.cmpi sle, %6, %47 : vector<1x1024xi32>
    %cst_22 = arith.constant 1.000000e+00 : f32
    %cst_23 = arith.constant 0.000000e+00 : f32
    %49 = vector.broadcast %cst_22 : f32 to vector<1x1024xf32>
    %50 = vector.broadcast %cst_23 : f32 to vector<1x1024xf32>
    %51 = arith.select %48, %49, %50 : vector<1x1024xi1>, vector<1x1024xf32>
    %52 = arith.mulf %46, %51 : vector<1x1024xf32>
    %c5 = arith.constant 5 : index
    %c0_24 = arith.constant 0 : index
    %53 = vector.load %arg4[%c5, %c0_24] : memref<16x1024xf32, #tpu.memory_space<vmem>>, vector<1x1024xf32>
    tpu.vector_store %arg4[%c5, %c0_24], %52 {strides = array<i32>} : memref<16x1024xf32, #tpu.memory_space<vmem>>, vector<1x1024xf32>,
    %c993_i32 = arith.constant 993 : i32
    %54 = tpu.dynamic_rotate %0 by %c993_i32 dim 1 : vector<1x1024xf32>, i32 -> vector<1x1024xf32>
    %c30_i32_25 = arith.constant 30 : i32
    %55 = vector.broadcast %c30_i32_25 : i32 to vector<1x1024xi32>
    %56 = arith.cmpi sle, %4, %55 : vector<1x1024xi32>
    %c1_i32_26 = arith.constant 1 : i32
    %57 = vector.broadcast %c1_i32_26 : i32 to vector<1x1024xi32>
    %58 = arith.cmpi sge, %6, %57 : vector<1x1024xi32>
    %59 = arith.andi %56, %58 : vector<1x1024xi1>
    %cst_27 = arith.constant 1.000000e+00 : f32
    %cst_28 = arith.constant 0.000000e+00 : f32
    %60 = vector.broadcast %cst_27 : f32 to vector<1x1024xf32>
    %61 = vector.broadcast %cst_28 : f32 to vector<1x1024xf32>
    %62 = arith.select %59, %60, %61 : vector<1x1024xi1>, vector<1x1024xf32>
    %63 = arith.mulf %54, %62 : vector<1x1024xf32>
    %c6 = arith.constant 6 : index
    %c0_29 = arith.constant 0 : index
    %64 = vector.load %arg4[%c6, %c0_29] : memref<16x1024xf32, #tpu.memory_space<vmem>>, vector<1x1024xf32>
    tpu.vector_store %arg4[%c6, %c0_29], %63 {strides = array<i32>} : memref<16x1024xf32, #tpu.memory_space<vmem>>, vector<1x1024xf32>,
    %c992_i32 = arith.constant 992 : i32
    %65 = tpu.dynamic_rotate %0 by %c992_i32 dim 1 : vector<1x1024xf32>, i32 -> vector<1x1024xf32>
    %c30_i32_30 = arith.constant 30 : i32
    %66 = vector.broadcast %c30_i32_30 : i32 to vector<1x1024xi32>
    %67 = arith.cmpi sle, %4, %66 : vector<1x1024xi32>
    %cst_31 = arith.constant 1.000000e+00 : f32
    %cst_32 = arith.constant 0.000000e+00 : f32
    %68 = vector.broadcast %cst_31 : f32 to vector<1x1024xf32>
    %69 = vector.broadcast %cst_32 : f32 to vector<1x1024xf32>
    %70 = arith.select %67, %68, %69 : vector<1x1024xi1>, vector<1x1024xf32>
    %71 = arith.mulf %65, %70 : vector<1x1024xf32>
    %c7 = arith.constant 7 : index
    %c0_33 = arith.constant 0 : index
    %72 = vector.load %arg4[%c7, %c0_33] : memref<16x1024xf32, #tpu.memory_space<vmem>>, vector<1x1024xf32>
    tpu.vector_store %arg4[%c7, %c0_33], %71 {strides = array<i32>} : memref<16x1024xf32, #tpu.memory_space<vmem>>, vector<1x1024xf32>,
    %c991_i32 = arith.constant 991 : i32
    %73 = tpu.dynamic_rotate %0 by %c991_i32 dim 1 : vector<1x1024xf32>, i32 -> vector<1x1024xf32>
    %c30_i32_34 = arith.constant 30 : i32
    %74 = vector.broadcast %c30_i32_34 : i32 to vector<1x1024xi32>
    %75 = arith.cmpi sle, %4, %74 : vector<1x1024xi32>
    %c30_i32_35 = arith.constant 30 : i32
    %76 = vector.broadcast %c30_i32_35 : i32 to vector<1x1024xi32>
    %77 = arith.cmpi sle, %6, %76 : vector<1x1024xi32>
    %78 = arith.andi %75, %77 : vector<1x1024xi1>
    %cst_36 = arith.constant 1.000000e+00 : f32
    %cst_37 = arith.constant 0.000000e+00 : f32
    %79 = vector.broadcast %cst_36 : f32 to vector<1x1024xf32>
    %80 = vector.broadcast %cst_37 : f32 to vector<1x1024xf32>
    %81 = arith.select %78, %79, %80 : vector<1x1024xi1>, vector<1x1024xf32>
    %82 = arith.mulf %73, %81 : vector<1x1024xf32>
    %c8 = arith.constant 8 : index
    %c0_38 = arith.constant 0 : index
    %83 = vector.load %arg4[%c8, %c0_38] : memref<16x1024xf32, #tpu.memory_space<vmem>>, vector<1x1024xf32>
    tpu.vector_store %arg4[%c8, %c0_38], %82 {strides = array<i32>} : memref<16x1024xf32, #tpu.memory_space<vmem>>, vector<1x1024xf32>,
    %c9 = arith.constant 9 : index
    %c0_39 = arith.constant 0 : index
    %84 = vector.load %arg4[%c9, %c0_39] : memref<16x1024xf32, #tpu.memory_space<vmem>>, vector<1x1024xf32>
    tpu.vector_store %arg4[%c9, %c0_39], %2 {strides = array<i32>} : memref<16x1024xf32, #tpu.memory_space<vmem>>, vector<1x1024xf32>,
    %cst_40 = arith.constant 0.000000e+00 : f32
    %85 = vector.broadcast %cst_40 : f32 to vector<6x1024xf32>
    %c10 = arith.constant 10 : index
    %c0_41 = arith.constant 0 : index
    %86 = vector.load %arg4[%c10, %c0_41] : memref<16x1024xf32, #tpu.memory_space<vmem>>, vector<6x1024xf32>
    tpu.vector_store %arg4[%c10, %c0_41], %85 {strides = array<i32>} : memref<16x1024xf32, #tpu.memory_space<vmem>>, vector<6x1024xf32>,
    %c16 = arith.constant 16 : index
    %c0_42 = arith.constant 0 : index
    %87 = vector.load %arg2[%c16, %c0_42] : memref<32x128xf32, #tpu.memory_space<vmem>>, vector<8x16xf32>
    %c0_43 = arith.constant 0 : index
    %c0_44 = arith.constant 0 : index
    %88 = vector.load %arg4[%c0_43, %c0_44] : memref<16x1024xf32, #tpu.memory_space<vmem>>, vector<16x1024xf32>
    %cst_45 = arith.constant dense<0.000000e+00> : vector<8x1024xf32>
    %89 = tpu.matmul %87, %88, %cst_45 {dimension_numbers = #tpu.dot_dimension_numbers<[1], [0], [0], [1], [0, 0, 1, 1], [], []>} : vector<8x16xf32>, vector<16x1024xf32>, vector<8x1024xf32> -> vector<8x1024xf32>
    %cst_46 = arith.constant 0.000000e+00 : f32
    %90 = vector.broadcast %cst_46 : f32 to vector<8x1024xf32>
    %91 = arith.maximumf %89, %90 : vector<8x1024xf32>
    %c1023_i32_47 = arith.constant 1023 : i32
    %92 = tpu.dynamic_rotate %91 by %c1023_i32_47 dim 1 : vector<8x1024xf32>, i32 -> vector<8x1024xf32>
    %93 = arith.maximumf %91, %92 : vector<8x1024xf32>
    %c992_i32_48 = arith.constant 992 : i32
    %94 = tpu.dynamic_rotate %93 by %c992_i32_48 dim 1 : vector<8x1024xf32>, i32 -> vector<8x1024xf32>
    %95 = arith.maximumf %93, %94 : vector<8x1024xf32>
    %c6_i32 = arith.constant 6 : i32
    %96 = vector.broadcast %c6_i32 : i32 to vector<1x1024xi32>
    %97 = arith.shrsi %1, %96 : vector<1x1024xi32>
    %c63_i32 = arith.constant 63 : i32
    %98 = vector.broadcast %c63_i32 : i32 to vector<1x1024xi32>
    %99 = arith.andi %1, %98 : vector<1x1024xi32>
    %c1_i32_49 = arith.constant 1 : i32
    %100 = vector.broadcast %c1_i32_49 : i32 to vector<1x1024xi32>
    %101 = arith.shrsi %99, %100 : vector<1x1024xi32>
    %c66_i32 = arith.constant 66 : i32
    %102 = tpu.dynamic_rotate %95 by %c66_i32 dim 1 : vector<8x1024xf32>, i32 -> vector<8x1024xf32>
    %c1_i32_50 = arith.constant 1 : i32
    %103 = vector.broadcast %c1_i32_50 : i32 to vector<1x1024xi32>
    %104 = arith.cmpi sge, %97, %103 : vector<1x1024xi32>
    %c1_i32_51 = arith.constant 1 : i32
    %105 = vector.broadcast %c1_i32_51 : i32 to vector<1x1024xi32>
    %106 = arith.cmpi sge, %101, %105 : vector<1x1024xi32>
    %107 = arith.andi %104, %106 : vector<1x1024xi1>
    %cst_52 = arith.constant 1.000000e+00 : f32
    %cst_53 = arith.constant 0.000000e+00 : f32
    %108 = vector.broadcast %cst_52 : f32 to vector<1x1024xf32>
    %109 = vector.broadcast %cst_53 : f32 to vector<1x1024xf32>
    %110 = arith.select %107, %108, %109 : vector<1x1024xi1>, vector<1x1024xf32>
    %111 = vector.broadcast %110 : vector<1x1024xf32> to vector<8x1024xf32>
    %112 = arith.mulf %102, %111 : vector<8x1024xf32>
    %c0_54 = arith.constant 0 : index
    %c0_55 = arith.constant 0 : index
    %113 = vector.load %arg5[%c0_54, %c0_55] : memref<80x1024xf32, #tpu.memory_space<vmem>>, vector<8x1024xf32>
    tpu.vector_store %arg5[%c0_54, %c0_55], %112 {strides = array<i32>} : memref<80x1024xf32, #tpu.memory_space<vmem>>, vector<8x1024xf32>,
    %c64_i32 = arith.constant 64 : i32
    %114 = tpu.dynamic_rotate %95 by %c64_i32 dim 1 : vector<8x1024xf32>, i32 -> vector<8x1024xf32>
    %c1_i32_56 = arith.constant 1 : i32
    %115 = vector.broadcast %c1_i32_56 : i32 to vector<1x1024xi32>
    %116 = arith.cmpi sge, %97, %115 : vector<1x1024xi32>
    %cst_57 = arith.constant 1.000000e+00 : f32
    %cst_58 = arith.constant 0.000000e+00 : f32
    %117 = vector.broadcast %cst_57 : f32 to vector<1x1024xf32>
    %118 = vector.broadcast %cst_58 : f32 to vector<1x1024xf32>
    %119 = arith.select %116, %117, %118 : vector<1x1024xi1>, vector<1x1024xf32>
    %120 = vector.broadcast %119 : vector<1x1024xf32> to vector<8x1024xf32>
    %121 = arith.mulf %114, %120 : vector<8x1024xf32>
    %c8_59 = arith.constant 8 : index
    %c0_60 = arith.constant 0 : index
    %122 = vector.load %arg5[%c8_59, %c0_60] : memref<80x1024xf32, #tpu.memory_space<vmem>>, vector<8x1024xf32>
    tpu.vector_store %arg5[%c8_59, %c0_60], %121 {strides = array<i32>} : memref<80x1024xf32, #tpu.memory_space<vmem>>, vector<8x1024xf32>,
    %c62_i32 = arith.constant 62 : i32
    %123 = tpu.dynamic_rotate %95 by %c62_i32 dim 1 : vector<8x1024xf32>, i32 -> vector<8x1024xf32>
    %c1_i32_61 = arith.constant 1 : i32
    %124 = vector.broadcast %c1_i32_61 : i32 to vector<1x1024xi32>
    %125 = arith.cmpi sge, %97, %124 : vector<1x1024xi32>
    %c14_i32 = arith.constant 14 : i32
    %126 = vector.broadcast %c14_i32 : i32 to vector<1x1024xi32>
    %127 = arith.cmpi sle, %101, %126 : vector<1x1024xi32>
    %128 = arith.andi %125, %127 : vector<1x1024xi1>
    %cst_62 = arith.constant 1.000000e+00 : f32
    %cst_63 = arith.constant 0.000000e+00 : f32
    %129 = vector.broadcast %cst_62 : f32 to vector<1x1024xf32>
    %130 = vector.broadcast %cst_63 : f32 to vector<1x1024xf32>
    %131 = arith.select %128, %129, %130 : vector<1x1024xi1>, vector<1x1024xf32>
    %132 = vector.broadcast %131 : vector<1x1024xf32> to vector<8x1024xf32>
    %133 = arith.mulf %123, %132 : vector<8x1024xf32>
    %c16_64 = arith.constant 16 : index
    %c0_65 = arith.constant 0 : index
    %134 = vector.load %arg5[%c16_64, %c0_65] : memref<80x1024xf32, #tpu.memory_space<vmem>>, vector<8x1024xf32>
    tpu.vector_store %arg5[%c16_64, %c0_65], %133 {strides = array<i32>} : memref<80x1024xf32, #tpu.memory_space<vmem>>, vector<8x1024xf32>,
    %c2_i32 = arith.constant 2 : i32
    %135 = tpu.dynamic_rotate %95 by %c2_i32 dim 1 : vector<8x1024xf32>, i32 -> vector<8x1024xf32>
    %c1_i32_66 = arith.constant 1 : i32
    %136 = vector.broadcast %c1_i32_66 : i32 to vector<1x1024xi32>
    %137 = arith.cmpi sge, %101, %136 : vector<1x1024xi32>
    %cst_67 = arith.constant 1.000000e+00 : f32
    %cst_68 = arith.constant 0.000000e+00 : f32
    %138 = vector.broadcast %cst_67 : f32 to vector<1x1024xf32>
    %139 = vector.broadcast %cst_68 : f32 to vector<1x1024xf32>
    %140 = arith.select %137, %138, %139 : vector<1x1024xi1>, vector<1x1024xf32>
    %141 = vector.broadcast %140 : vector<1x1024xf32> to vector<8x1024xf32>
    %142 = arith.mulf %135, %141 : vector<8x1024xf32>
    %c24 = arith.constant 24 : index
    %c0_69 = arith.constant 0 : index
    %143 = vector.load %arg5[%c24, %c0_69] : memref<80x1024xf32, #tpu.memory_space<vmem>>, vector<8x1024xf32>
    tpu.vector_store %arg5[%c24, %c0_69], %142 {strides = array<i32>} : memref<80x1024xf32, #tpu.memory_space<vmem>>, vector<8x1024xf32>,
    %c32 = arith.constant 32 : index
    %c0_70 = arith.constant 0 : index
    %144 = vector.load %arg5[%c32, %c0_70] : memref<80x1024xf32, #tpu.memory_space<vmem>>, vector<8x1024xf32>
    tpu.vector_store %arg5[%c32, %c0_70], %95 {strides = array<i32>} : memref<80x1024xf32, #tpu.memory_space<vmem>>, vector<8x1024xf32>,
    %c1022_i32 = arith.constant 1022 : i32
    %145 = tpu.dynamic_rotate %95 by %c1022_i32 dim 1 : vector<8x1024xf32>, i32 -> vector<8x1024xf32>
    %c14_i32_71 = arith.constant 14 : i32
    %146 = vector.broadcast %c14_i32_71 : i32 to vector<1x1024xi32>
    %147 = arith.cmpi sle, %101, %146 : vector<1x1024xi32>
    %cst_72 = arith.constant 1.000000e+00 : f32
    %cst_73 = arith.constant 0.000000e+00 : f32
    %148 = vector.broadcast %cst_72 : f32 to vector<1x1024xf32>
    %149 = vector.broadcast %cst_73 : f32 to vector<1x1024xf32>
    %150 = arith.select %147, %148, %149 : vector<1x1024xi1>, vector<1x1024xf32>
    %151 = vector.broadcast %150 : vector<1x1024xf32> to vector<8x1024xf32>
    %152 = arith.mulf %145, %151 : vector<8x1024xf32>
    %c40 = arith.constant 40 : index
    %c0_74 = arith.constant 0 : index
    %153 = vector.load %arg5[%c40, %c0_74] : memref<80x1024xf32, #tpu.memory_space<vmem>>, vector<8x1024xf32>
    tpu.vector_store %arg5[%c40, %c0_74], %152 {strides = array<i32>} : memref<80x1024xf32, #tpu.memory_space<vmem>>, vector<8x1024xf32>,
    %c962_i32 = arith.constant 962 : i32
    %154 = tpu.dynamic_rotate %95 by %c962_i32 dim 1 : vector<8x1024xf32>, i32 -> vector<8x1024xf32>
    %c14_i32_75 = arith.constant 14 : i32
    %155 = vector.broadcast %c14_i32_75 : i32 to vector<1x1024xi32>
    %156 = arith.cmpi sle, %97, %155 : vector<1x1024xi32>
    %c1_i32_76 = arith.constant 1 : i32
    %157 = vector.broadcast %c1_i32_76 : i32 to vector<1x1024xi32>
    %158 = arith.cmpi sge, %101, %157 : vector<1x1024xi32>
    %159 = arith.andi %156, %158 : vector<1x1024xi1>
    %cst_77 = arith.constant 1.000000e+00 : f32
    %cst_78 = arith.constant 0.000000e+00 : f32
    %160 = vector.broadcast %cst_77 : f32 to vector<1x1024xf32>
    %161 = vector.broadcast %cst_78 : f32 to vector<1x1024xf32>
    %162 = arith.select %159, %160, %161 : vector<1x1024xi1>, vector<1x1024xf32>
    %163 = vector.broadcast %162 : vector<1x1024xf32> to vector<8x1024xf32>
    %164 = arith.mulf %154, %163 : vector<8x1024xf32>
    %c48 = arith.constant 48 : index
    %c0_79 = arith.constant 0 : index
    %165 = vector.load %arg5[%c48, %c0_79] : memref<80x1024xf32, #tpu.memory_space<vmem>>, vector<8x1024xf32>
    tpu.vector_store %arg5[%c48, %c0_79], %164 {strides = array<i32>} : memref<80x1024xf32, #tpu.memory_space<vmem>>, vector<8x1024xf32>,
    %c960_i32 = arith.constant 960 : i32
    %166 = tpu.dynamic_rotate %95 by %c960_i32 dim 1 : vector<8x1024xf32>, i32 -> vector<8x1024xf32>
    %c14_i32_80 = arith.constant 14 : i32
    %167 = vector.broadcast %c14_i32_80 : i32 to vector<1x1024xi32>
    %168 = arith.cmpi sle, %97, %167 : vector<1x1024xi32>
    %cst_81 = arith.constant 1.000000e+00 : f32
    %cst_82 = arith.constant 0.000000e+00 : f32
    %169 = vector.broadcast %cst_81 : f32 to vector<1x1024xf32>
    %170 = vector.broadcast %cst_82 : f32 to vector<1x1024xf32>
    %171 = arith.select %168, %169, %170 : vector<1x1024xi1>, vector<1x1024xf32>
    %172 = vector.broadcast %171 : vector<1x1024xf32> to vector<8x1024xf32>
    %173 = arith.mulf %166, %172 : vector<8x1024xf32>
    %c56 = arith.constant 56 : index
    %c0_83 = arith.constant 0 : index
    %174 = vector.load %arg5[%c56, %c0_83] : memref<80x1024xf32, #tpu.memory_space<vmem>>, vector<8x1024xf32>
    tpu.vector_store %arg5[%c56, %c0_83], %173 {strides = array<i32>} : memref<80x1024xf32, #tpu.memory_space<vmem>>, vector<8x1024xf32>,
    %c958_i32 = arith.constant 958 : i32
    %175 = tpu.dynamic_rotate %95 by %c958_i32 dim 1 : vector<8x1024xf32>, i32 -> vector<8x1024xf32>
    %c14_i32_84 = arith.constant 14 : i32
    %176 = vector.broadcast %c14_i32_84 : i32 to vector<1x1024xi32>
    %177 = arith.cmpi sle, %97, %176 : vector<1x1024xi32>
    %c14_i32_85 = arith.constant 14 : i32
    %178 = vector.broadcast %c14_i32_85 : i32 to vector<1x1024xi32>
    %179 = arith.cmpi sle, %101, %178 : vector<1x1024xi32>
    %180 = arith.andi %177, %179 : vector<1x1024xi1>
    %cst_86 = arith.constant 1.000000e+00 : f32
    %cst_87 = arith.constant 0.000000e+00 : f32
    %181 = vector.broadcast %cst_86 : f32 to vector<1x1024xf32>
    %182 = vector.broadcast %cst_87 : f32 to vector<1x1024xf32>
    %183 = arith.select %180, %181, %182 : vector<1x1024xi1>, vector<1x1024xf32>
    %184 = vector.broadcast %183 : vector<1x1024xf32> to vector<8x1024xf32>
    %185 = arith.mulf %175, %184 : vector<8x1024xf32>
    %c64 = arith.constant 64 : index
    %c0_88 = arith.constant 0 : index
    %186 = vector.load %arg5[%c64, %c0_88] : memref<80x1024xf32, #tpu.memory_space<vmem>>, vector<8x1024xf32>
    tpu.vector_store %arg5[%c64, %c0_88], %185 {strides = array<i32>} : memref<80x1024xf32, #tpu.memory_space<vmem>>, vector<8x1024xf32>,
    %c72 = arith.constant 72 : index
    %c0_89 = arith.constant 0 : index
    %187 = vector.load %arg5[%c72, %c0_89] : memref<80x1024xf32, #tpu.memory_space<vmem>>, vector<1x1024xf32>
    tpu.vector_store %arg5[%c72, %c0_89], %2 {strides = array<i32>} : memref<80x1024xf32, #tpu.memory_space<vmem>>, vector<1x1024xf32>,
    %cst_90 = arith.constant 0.000000e+00 : f32
    %188 = vector.broadcast %cst_90 : f32 to vector<7x1024xf32>
    %c73 = arith.constant 73 : index
    %c0_91 = arith.constant 0 : index
    %189 = vector.load %arg5[%c73, %c0_91] : memref<80x1024xf32, #tpu.memory_space<vmem>>, vector<7x1024xf32>
    tpu.vector_store %arg5[%c73, %c0_91], %188 {strides = array<i32>} : memref<80x1024xf32, #tpu.memory_space<vmem>>, vector<7x1024xf32>,
    %c0_92 = arith.constant 0 : index
    %c0_93 = arith.constant 0 : index
    %190 = vector.load %arg2[%c0_92, %c0_93] : memref<32x128xf32, #tpu.memory_space<vmem>>, vector<16x80xf32>
    %c0_94 = arith.constant 0 : index
    %c0_95 = arith.constant 0 : index
    %191 = vector.load %arg5[%c0_94, %c0_95] : memref<80x1024xf32, #tpu.memory_space<vmem>>, vector<80x1024xf32>
    %cst_96 = arith.constant dense<0.000000e+00> : vector<16x1024xf32>
    %192 = tpu.matmul %190, %191, %cst_96 {dimension_numbers = #tpu.dot_dimension_numbers<[1], [0], [0], [1], [0, 0, 1, 1], [], []>} : vector<16x80xf32>, vector<80x1024xf32>, vector<16x1024xf32> -> vector<16x1024xf32>
    %cst_97 = arith.constant 0.000000e+00 : f32
    %193 = vector.broadcast %cst_97 : f32 to vector<16x1024xf32>
    %194 = arith.maximumf %192, %193 : vector<16x1024xf32>
    %c0_98 = arith.constant 0 : index
    %c0_99 = arith.constant 0 : index
    %195 = vector.load %arg1[%c0_98, %c0_99] : memref<16x1024xf32, #tpu.memory_space<vmem>>, vector<16x1024xf32>
    %196 = arith.mulf %194, %195 : vector<16x1024xf32>
    %cst_100 = arith.constant dense<0.000000e+00> : vector<16xf32>
    %197 = vector.multi_reduction <add>, %196, %cst_100 [1] : vector<16x1024xf32> to vector<16xf32>
    %198 = vector.shape_cast %197 : vector<16xf32> to vector<16x1xf32>
    %cst_101 = arith.constant dense<0.000000e+00> : vector<1xf32>
    %199 = vector.multi_reduction <add>, %198, %cst_101 [0] : vector<16x1xf32> to vector<1xf32>
    %200 = vector.shape_cast %199 : vector<1xf32> to vector<1x1xf32>
    %c24_102 = arith.constant 24 : index
    %c0_103 = arith.constant 0 : index
    %201 = vector.load %arg2[%c24_102, %c0_103] : memref<32x128xf32, #tpu.memory_space<vmem>>, vector<1x1xf32>
    %202 = arith.addf %200, %201 : vector<1x1xf32>
    %c0_104 = arith.constant 0 : index
    %c0_105 = arith.constant 0 : index
    %203 = vector.load %arg3[%c0_104, %c0_105] : memref<1x1xf32, #tpu.memory_space<vmem>>, vector<1x1xf32>
    tpu.vector_store %arg3[%c0_104, %c0_105], %202 {strides = array<i32>} : memref<1x1xf32, #tpu.memory_space<vmem>>, vector<1x1xf32>,
    return
  }
}

</mosaic_0001>

<bundles_post_ra>
// kernel: fcnn_forward.1
= control target key start
LH: loop header
LB: loop body
LE: loop exit
PB: predicated region body
PF: predicated region fallthrough
CT: control target
= control target key end

     0   :  { %8 = vsyncpa [#allocation5], 0  ;;  %s4190_s0 = inlined_call_operand.vmem [shape: f32[1,1024], index: 0, kind: input, shape index: {}]   ;;  %s4191_s1 = inlined_call_operand.hbm [shape: f32[16,1024], index: 1, kind: input, shape index: {}]   ;;  %s4192_s2 = inlined_call_operand.vmem [shape: f32[32,128], index: 2, kind: input, shape index: {}]   ;;  %s4193_s3 = inlined_call_operand.hbm [shape: f32[1,1], index: 3, kind: output, shape index: {}]  }
   0x1   :  { %9 = vsyncpa [#allocation6], 0  ;;  %s2354_s12 = smov [#allocation4]  }
   0x2   :  { %s17_s13 = sshll.u32 %s2354_s12, 4  ;;  %s18_s13 = int_to_ptr.vmem [resolvable:$true] %s17_s13 }
   0x3   :  { %s2318_s14 = scalar_lea.vmem %s18_s13, 2048  ;;  %p2323_p1 = scmp.lt.s32.totalorder %s18_s13, %s18_s13 }
   0x4   :  { %p2319_p0 = scmp.ne.s32.totalorder %s18_s13, %s2318_s14  ;;  %p2324_p2 = scmp.lt.s32.totalorder %s2318_s14, %s2318_s14 }
   0x6   :  { %p2325_p3 = por %p2324_p2, %p2323_p1 }
   0x8   :  { %p2326_p4 = pnand %p2325_p3, %p2319_p0 }
   0xa   :  { %2329 = shalt.err (!%p2326_p4)
}
   0xb   :  { %s2355_s15 = smov 1024   ;;  %s2356_s16 = smov 64  }
   0xc   :  { %23 = dma.hbm_to_vmem [thread:$0]  %s4191_s1, 2048, %s18_s13, [#allocation5], %s2355_s15, %s2355_s15, %s2356_s16  }
   0xd   :  { %2350 = dma.done.wait [#allocation5], 2048  }
   0xe   :  { %2351 = vsyncadd [#allocation5], 4294965248  ;;  %v30_v0 = vlaneseq  ;;  %v4242_v2 = vmov 0.0   ;;  %v29_v7 = vld [vmem:[%s4190_s0] sm:$0xff]  ;;  %s2358_s20 = smov 95   ;;  %s2359_s0 = smov 33  }
   0xf   :  { %981 = vst [vmem:[#allocation2 + $0x40] sm:$0xfc] %v4242_v2  ;;  %982 = vst [vmem:[#allocation2 + $0x48] sm:$0xfc] %v4242_v2  ;;  %1074 = vmatprep.mubr.f32.mxu0 %v4242_v2  ;;  %1145 = vmatprep.mubr.f32.mxu1 %v4242_v2  ;;  %v2360_v20 = vmov 1.0   ;;  %s2361_s21 = smov 32  }
  0x10   :  { %v2398_v1 = vshrl.u32 %v30_v0, 7  ;;  %983 = vst [vmem:[#allocation2 + $0x50] sm:$0xfc] %v4242_v2  ;;  %984 = vst [vmem:[#allocation2 + $0x58] sm:$0xfc] %v4242_v2  ;;  %s2362_s22 = smov 31  }
  0x11   :  { %985 = vst [vmem:[#allocation2 + $0x60] sm:$0xfc] %v4242_v2  ;;  %986 = vst [vmem:[#allocation2 + $0x68] sm:$0xfc] %v4242_v2  ;;  %s2363_s23 = smov 1   ;;  %s2364_s24 = smov 127  }
  0x12   :  { %987 = vst [vmem:[#allocation2 + $0x70] sm:$0xfc] %v4242_v2  ;;  %988 = vst [vmem:[#allocation2 + $0x78] sm:$0xfc] %v4242_v2  ;;  %v66_v3 = vsub.s32 2, %v2398_v1  ;;  %v58_v4 = vsub.s32 0, %v2398_v1 }
  0x13   :  { %1782 = vst [vmem:[#allocation3 + $0x240] sm:$0xfe] %v4242_v2  ;;  %1783 = vst [vmem:[#allocation3 + $0x248] sm:$0xfe] %v4242_v2  ;;  %v70_v5 = vsub.s32 3, %v2398_v1  ;;  %v62_v6 = vsub.s32 1, %v2398_v1 }
  0x14   :  { %1784 = vst [vmem:[#allocation3 + $0x250] sm:$0xfe] %v4242_v2  ;;  %1785 = vst [vmem:[#allocation3 + $0x258] sm:$0xfe] %v4242_v2  ;;  %v2425_v8 = vrot.slane %v29_v7, %v66_v3  ;;  %v2427_v9 = vrot.slane %v29_v7, %v58_v4  ;;  %v78_v12 = vsub.s32 5, %v2398_v1  ;;  %v74_v13 = vsub.s32 4, %v2398_v1 }
  0x15   :  { %1786 = vst [vmem:[#allocation3 + $0x260] sm:$0xfe] %v4242_v2  ;;  %1787 = vst [vmem:[#allocation3 + $0x268] sm:$0xfe] %v4242_v2  ;;  %v2431_v10 = vrot.slane %v29_v7, %v70_v5  ;;  %v2433_v11 = vrot.slane %v29_v7, %v62_v6  ;;  %v86_v16 = vsub.s32 7, %v2398_v1  ;;  %v82_v17 = vsub.s32 6, %v2398_v1 }
  0x16   :  { %1788 = vst [vmem:[#allocation3 + $0x270] sm:$0xfe] %v4242_v2  ;;  %1789 = vst [vmem:[#allocation3 + $0x278] sm:$0xfe] %v4242_v2  ;;  %872 = vrot.lane.b32.xlu1 %v2425_v8, %s2358_s20  ;;  %868 = vrot.lane.b32.xlu0 %v2427_v9, %s2358_s20  ;;  %v2439_v14 = vrot.slane %v29_v7, %v78_v12  ;;  %v2441_v15 = vrot.slane %v29_v7, %v74_v13  ;;  %s2365_s25 = smov 97   ;;  %v2504_v21 = vand.u32 127, %v30_v0 }
  0x17   :  { %544 = vst [vmem:[#allocation2 + $0x4] ss:$8 sm:$0xf] %v29_v7  ;;  %545 = vst [vmem:[#allocation2 + $0x4] ss:$8 sm:$0xf0] %v29_v7  ;;  %v2447_v18 = vrot.slane %v29_v7, %v86_v16  ;;  %v2449_v19 = vrot.slane %v29_v7, %v82_v17 }
  0x18   :  { %979 = vst [vmem:[#allocation2 + $0x41] ss:$8 sm:$0xf] %v2360_v20  ;;  %980 = vst [vmem:[#allocation2 + $0x41] ss:$8 sm:$0xf0] %v2360_v20 }
  0x19   :  { %1780 = vst [vmem:[#allocation3 + $0x240] ss:$8 sm:$0xf] %v2360_v20  ;;  %1781 = vst [vmem:[#allocation3 + $0x240] ss:$8 sm:$0xf0] %v2360_v20 }
  0x1a   :  { %874 = vrot.lane.b32.xlu1 %v2431_v10, %s2358_s20  ;;  %870 = vrot.lane.b32.xlu0 %v2433_v11, %s2358_s20  ;;  %v2511_v22 = vadd.s32 128, %v2504_v21  ;;  %v2514_v23 = vadd.s32 256, %v2504_v21  ;;  %v47_v24 = vand.u32 31, %v2504_v21  ;;  %v39_v25 = vshra.s32 %v2504_v21, 5  ;;  %s2366_s26 = smov 96   ;;  %s2368_s29 = smov 62  }
  0x1b   :  { %v2519_v26 = vadd.s32 384, %v2504_v21  ;;  %v2526_v29 = vadd.s32 512, %v2504_v21  ;;  %v2529_v30 = vadd.s32 896, %v2504_v21  ;;  %v4270_v33 = vmov 0  ;;  %s2369_s30 = smov 126   ;;  %s2370_s4 = smov 66  }
  0x1c   :  { %v40_v27 = vshra.s32 %v2511_v22, 5  ;;  %v48_v28 = vand.u32 31, %v2511_v22  ;;  %v41_v31 = vshra.s32 %v2514_v23, 5  ;;  %v49_v32 = vand.u32 31, %v2514_v23  ;;  %s2371_s5 = smov 2   ;;  %s2372_s12 = smov [#allocation7]  }
  0x1d   :  { %4268 = vst [vmem:[#allocation10_spill] sm:$0xff] %v2526_v29  ;;  %4269 = vst [vmem:[#allocation11_spill] sm:$0xff] %v2529_v30  ;;  %vm2535_vm0 = vcmp.le.s32.totalorder %v47_v24, 30  ;;  %v2540_v34 = vadd.s32 640, %v2504_v21  ;;  %vm2544_vm1 = vcmp.le.s32.totalorder %v39_v25, 30  ;;  %v4273_v35 = vmov 0 }
  0x1e   :  { %878 = vrot.lane.b32.xlu1 %v2439_v14, %s2358_s20  ;;  %876 = vrot.lane.b32.xlu0 %v2441_v15, %s2358_s20  ;;  %v4271_v33 = vsel %vm2535_vm0, 4294967295, %v4270_v33  ;;  %v4274_v35 = vsel %vm2544_vm1, 4294967295, %v4273_v35  ;;  %v42_v36 = vshra.s32 %v2519_v26, 5  ;;  %v50_v37 = vand.u32 31, %v2519_v26  ;;  %vm893_vm6 = vmand %vm2544_vm1, %vm2535_vm0  ;;  %s2270_s13 = sshll.u32 %s2372_s12, 4  ;;  %s2271_s13 = int_to_ptr.vmem [resolvable:$true] %s2270_s13 }
  0x1f   :  { %4272 = vst [vmem:[#allocation12_spill] sm:$0xff] %v2540_v34  ;;  %v2551_v38 = vadd.s32 768, %v2504_v21  ;;  %vm2559_vm2 = vcmp.le.s32.totalorder %v48_v28, 30  ;;  %v4276_v39 = vmov 0  ;;  %vm2565_vm3 = vcmp.le.s32.totalorder %v40_v27, 30  ;;  %s2330_s14 = scalar_lea.vmem %s2271_s13, 16  ;;  %p2335_p6 = scmp.lt.s32.totalorder %s2271_s13, %s2271_s13 }
  0x20   :  { %v4277_v39 = vsel %vm2559_vm2, 4294967295, %v4276_v39  ;;  %v4278_v40 = vmov 0  ;;  %v43_v41 = vshra.s32 %v2526_v29, 5  ;;  %v51_v42 = vand.u32 31, %v2526_v29  ;;  %vm894_vm7 = vmand %vm2565_vm3, %vm2559_vm2  ;;  %p2331_p5 = scmp.ne.s32.totalorder %s2271_s13, %s2330_s14  ;;  %s2334_s15 = scalar_lea.vmem %s2271_s13, 32 }
  0x21   :  { %4275 = vst [vmem:[#allocation13_spill] sm:$0xff] %v2551_v38  ;;  %v4279_v40 = vsel %vm2565_vm3, 4294967295, %v4278_v40  ;;  %v46_v43 = vshra.s32 %v2529_v30, 5  ;;  %v54_v44 = vand.u32 31, %v2529_v30  ;;  %vm2577_vm4 = vcmp.le.s32.totalorder %v49_v32, 30  ;;  %p2336_p7 = scmp.lt.s32.totalorder %s2334_s15, %s2330_s14 }
  0x22   :  { %882 = vrot.lane.b32.xlu1 %v2447_v18, %s2358_s20  ;;  %880 = vrot.lane.b32.xlu0 %v2449_v19, %s2358_s20  ;;  %v4280_v47 = vmov 0  ;;  %vm2583_vm5 = vcmp.le.s32.totalorder %v41_v31, 30  ;;  %v4282_v48 = vmov 0  ;;  %v44_v49 = vshra.s32 %v2540_v34, 5 }
  0x23   :  { %v4281_v47 = vsel %vm2577_vm4, 4294967295, %v4280_v47  ;;  %v4283_v48 = vsel %vm2583_vm5, 4294967295, %v4282_v48  ;;  %v52_v50 = vand.u32 31, %v2540_v34  ;;  %vm2599_vm8 = vcmp.le.s32.totalorder %v50_v37, 30  ;;  %p2337_p8 = por %p2336_p7, %p2335_p6 }
  0x24   :  { %v4284_v51 = vmov 0  ;;  %vm2605_vm9 = vcmp.le.s32.totalorder %v42_v36, 30  ;;  %v4286_v52 = vmov 0  ;;  %v45_v53 = vshra.s32 %v2551_v38, 5 }
  0x25   :  { %v4285_v51 = vsel %vm2599_vm8, 4294967295, %v4284_v51  ;;  %v4287_v52 = vsel %vm2605_vm9, 4294967295, %v4286_v52  ;;  %v53_v54 = vand.u32 31, %v2551_v38  ;;  %vm2618_vm11 = vcmp.le.s32.totalorder %v51_v42, 30  ;;  %vm896_vm13 = vmand %vm2605_vm9, %vm2599_vm8  ;;  %p2338_p9 = pnand %p2337_p8, %p2331_p5 }
  0x26   :  { %98 = vrot.lane.b32.xlu1 %v2433_v11, %s2359_s0  ;;  %96 = vrot.lane.b32.xlu0 %v2427_v9, %s2359_s0  ;;  %v4288_v55 = vmov 0  ;;  %vm2624_vm12 = vcmp.le.s32.totalorder %v43_v41, 30  ;;  %v4290_v56 = vmov 0  ;;  %v2367_v57 = vmov 1966171168  }
  0x27   :  { %v4289_v55 = vsel %vm2618_vm11, 4294967295, %v4288_v55  ;;  %v4291_v56 = vsel %vm2624_vm12, 4294967295, %v4290_v56  ;;  %v174_v58 = vunpack.c.l.s4 %v2367_v57  ;;  %vm2634_vm14 = vcmp.le.s32.totalorder %v54_v44, 30 }
  0x28   :  { %v4292_v59 = vmov 0  ;;  %vm2640_vm15 = vcmp.le.s32.totalorder %v46_v43, 30  ;;  %v4294_v60 = vmov 0  ;;  %v901_v62 = vsel %vm893_vm6, 1.0, %v4242_v2 }
  0x29   :  { %v4293_v59 = vsel %vm2634_vm14, 4294967295, %v4292_v59  ;;  %v4295_v60 = vsel %vm2640_vm15, 4294967295, %v4294_v60  ;;  %v902_v63 = vsel %vm894_vm7, 1.0, %v4242_v2  ;;  %vm2662_vm10 = vcmp.le.s32.totalorder %v52_v50, 30 }
  0x2a   :  { %102 = vrot.lane.b32.xlu1 %v2431_v10, %s2359_s0  ;;  %100 = vrot.lane.b32.xlu0 %v2425_v8, %s2359_s0  ;;  %v4296_v3 = vmov 0  ;;  %vm2668_vm6 = vcmp.le.s32.totalorder %v44_v49, 30  ;;  %v4298_v4 = vmov 0  ;;  %vm4300_vm7 = vcmp.lt.s32.totalorder %v2504_v21, 95 }
  0x2b   :  { %v4297_v3 = vsel %vm2662_vm10, 4294967295, %v4296_v3  ;;  %v4299_v4 = vsel %vm2668_vm6, 4294967295, %v4298_v4  ;;  %vm4301_vm3 = vmmov %vm4300_vm7  ;;  %vm2683_vm1 = vcmp.le.s32.totalorder %v53_v54, 30  ;;  %v4302_v7 = vmov 0 }
  0x2c   :  { %v4303_v7 = vsel %vm2683_vm1, 4294967295, %v4302_v7  ;;  %vm2689_vm0 = vcmp.le.s32.totalorder %v45_v53, 30  ;;  %vm4307_vm9 = vmmov %vm4301_vm3  ;;  %v904_v12 = vsel %vm896_vm13, 1.0, %v4242_v2  ;;  %vm2845_vm8 = vcmp.ge.s32.totalorder %v45_v53, 1 }
  0x2d   :  { %vm898_vm2 = vmand %vm2668_vm6, %vm2662_vm10  ;;  %vm2790_vm6 = vcmp.ge.s32.totalorder %v40_v27, 1  ;;  %vm2828_vm10 = vcmp.ge.s32.totalorder %v39_v25, 1 }
  0x2e   :  { %106 = vrot.lane.b32.xlu1 %v2439_v14, %s2359_s0  ;;  %104 = vrot.lane.b32.xlu0 %v2441_v15, %s2359_s0 }
  0x32   :  { %110 = vrot.lane.b32.xlu1 %v2447_v18, %s2359_s0  ;;  %108 = vrot.lane.b32.xlu0 %v2449_v19, %s2359_s0 }
  0x36   :  { %223 = vrot.lane.b32.xlu1 %v2433_v11, %s2361_s21  ;;  %221 = vrot.lane.b32.xlu0 %v2427_v9, %s2361_s21 }
  0x3a   :  { %227 = vrot.lane.b32.xlu1 %v2431_v10, %s2361_s21  ;;  %225 = vrot.lane.b32.xlu0 %v2425_v8, %s2361_s21 }
  0x3e   :  { %231 = vrot.lane.b32.xlu1 %v2439_v14, %s2361_s21  ;;  %229 = vrot.lane.b32.xlu0 %v2441_v15, %s2361_s21 }
  0x42   :  { %235 = vrot.lane.b32.xlu1 %v2447_v18, %s2361_s21  ;;  %233 = vrot.lane.b32.xlu0 %v2449_v19, %s2361_s21 }
  0x46   :  { %325 = vrot.lane.b32.xlu1 %v2433_v11, %s2362_s22  ;;  %323 = vrot.lane.b32.xlu0 %v2427_v9, %s2362_s22 }
  0x4a   :  { %329 = vrot.lane.b32.xlu1 %v2431_v10, %s2362_s22  ;;  %327 = vrot.lane.b32.xlu0 %v2425_v8, %s2362_s22 }
  0x4e   :  { %333 = vrot.lane.b32.xlu1 %v2439_v14, %s2362_s22  ;;  %331 = vrot.lane.b32.xlu0 %v2441_v15, %s2362_s22 }
  0x52   :  { %337 = vrot.lane.b32.xlu1 %v2447_v18, %s2362_s22  ;;  %335 = vrot.lane.b32.xlu0 %v2449_v19, %s2362_s22 }
  0x56   :  { %443 = vrot.lane.b32.xlu1 %v2433_v11, %s2363_s23  ;;  %441 = vrot.lane.b32.xlu0 %v2427_v9, %s2363_s23 }
  0x5a   :  { %447 = vrot.lane.b32.xlu1 %v2431_v10, %s2363_s23  ;;  %445 = vrot.lane.b32.xlu0 %v2425_v8, %s2363_s23 }
  0x5e   :  { %451 = vrot.lane.b32.xlu1 %v2439_v14, %s2363_s23  ;;  %449 = vrot.lane.b32.xlu0 %v2441_v15, %s2363_s23 }
  0x62   :  { %455 = vrot.lane.b32.xlu1 %v2447_v18, %s2363_s23  ;;  %453 = vrot.lane.b32.xlu0 %v2449_v19, %s2363_s23 }
  0x66   :  { %548 = vrot.lane.b32.xlu1 %v2433_v11, %s2364_s24  ;;  %546 = vrot.lane.b32.xlu0 %v2427_v9, %s2364_s24 }
  0x6a   :  { %552 = vrot.lane.b32.xlu1 %v2431_v10, %s2364_s24  ;;  %550 = vrot.lane.b32.xlu0 %v2425_v8, %s2364_s24 }
  0x6e   :  { %556 = vrot.lane.b32.xlu1 %v2439_v14, %s2364_s24  ;;  %554 = vrot.lane.b32.xlu0 %v2441_v15, %s2364_s24 }
  0x72   :  { %560 = vrot.lane.b32.xlu1 %v2447_v18, %s2364_s24  ;;  %558 = vrot.lane.b32.xlu0 %v2449_v19, %s2364_s24 }
  0x76   :  { %650 = vrot.lane.b32.xlu1 %v2433_v11, %s2365_s25  ;;  %648 = vrot.lane.b32.xlu0 %v2427_v9, %s2365_s25 }
  0x7a   :  { %654 = vrot.lane.b32.xlu1 %v2431_v10, %s2365_s25  ;;  %652 = vrot.lane.b32.xlu0 %v2425_v8, %s2365_s25 }
  0x7e   :  { %658 = vrot.lane.b32.xlu1 %v2439_v14, %s2365_s25  ;;  %656 = vrot.lane.b32.xlu0 %v2441_v15, %s2365_s25 }
  0x82   :  { %662 = vrot.lane.b32.xlu1 %v2447_v18, %s2365_s25  ;;  %660 = vrot.lane.b32.xlu0 %v2449_v19, %s2365_s25 }
  0x86   :  { %768 = vrot.lane.b32.xlu1 %v2433_v11, %s2366_s26  ;;  %766 = vrot.lane.b32.xlu0 %v2427_v9, %s2366_s26  ;;  %v175_v9 = vunpack.c.0.s8 %v174_v58 }
  0x88   :  { %v873_v45 = vpop.permute.xlu1 %872  ;;  %v2573_v46 = vpop.permute.xlu0 %868 }
  0x8a   :  { %772 = vrot.lane.b32.xlu1 %v2431_v10, %s2366_s26  ;;  %770 = vrot.lane.b32.xlu0 %v2425_v8, %s2366_s26  ;;  %v4304_v8 = vmov 0 }
  0x8b   :  { %v4305_v8 = vsel %vm2689_vm0, 4294967295, %v4304_v8 }
  0x8c   :  { %v875_v61 = vpop.permute.xlu1 %874  ;;  %v871_v0 = vpop.permute.xlu0 %870 }
  0x8d   :  { %v890_v5 = vsel %vm4300_vm7, %v871_v0, %v873_v45  ;;  %v891_v6 = vsel %vm4301_vm3, %v2573_v46, %v871_v0  ;;  %vm4306_vm7 = vmand %vm2583_vm5, %vm2577_vm4  ;;  %v889_v11 = vsel %vm4307_vm9, %v873_v45, %v875_v61  ;;  %vm2806_vm5 = vcmp.ge.s32.totalorder %v52_v50, 1 }
  0x8e   :  { %776 = vrot.lane.b32.xlu1 %v2439_v14, %s2366_s26  ;;  %774 = vrot.lane.b32.xlu0 %v2441_v15, %s2366_s26  ;;  %v903_v10 = vsel %vm4306_vm7, 1.0, %v4242_v2  ;;  %v909_v13 = vmul.f32 %v901_v62, %v891_v6  ;;  %v910_v14 = vmul.f32 %v902_v63, %v890_v5  ;;  %vm899_vm3 = vmand %vm2689_vm0, %vm2683_vm1  ;;  %v906_v63 = vsel %vm898_vm2, 1.0, %v4242_v2 }
  0x8f   :  { %vm4308_vm7 = vmmov %vm4307_vm9  ;;  %v911_v20 = vmul.f32 %v903_v10, %v889_v11  ;;  %v907_v0 = vsel %vm899_vm3, 1.0, %v4242_v2  ;;  %vm4316_vm2 = vcmp.lt.s32.totalorder %v2504_v21, 95  ;;  %vm2765_vm0 = vcmp.ge.s32.totalorder %v42_v36, 1 }
  0x90   :  { %v879_v15 = vpop.permute.xlu1 %878  ;;  %v877_v16 = vpop.permute.xlu0 %876  ;;  %vm4309_vm9 = vmand %vm2624_vm12, %vm2618_vm11  ;;  %v925_v5 = vcombine.low %v909_v13, %v910_v14  ;;  %vm2800_vm12 = vcmp.ge.s32.totalorder %v44_v49, 1  ;;  %vm2834_vm11 = vcmp.ge.s32.totalorder %v47_v24, 1  ;;  %vm2851_vm4 = vcmp.ge.s32.totalorder %v53_v54, 1 }
  0x91   :  { %v888_v17 = vsel %vm4308_vm7, %v875_v61, %v877_v16  ;;  %v905_v45 = vsel %vm4309_vm9, 1.0, %v4242_v2  ;;  %vm4310_vm13 = vmmov %vm4308_vm7  ;;  %v2733_v61 = vsub.s32 %v175_v9, %v2398_v1  ;;  %vm2745_vm9 = vcmp.ge.s32.totalorder %v41_v31, 1 }
  0x92   :  { %v887_v57 = vsel %vm4310_vm13, %v877_v16, %v879_v15  ;;  %v912_v58 = vmul.f32 %v904_v12, %v888_v17  ;;  %780 = vrot.lane.b32.xlu1 %v2447_v18, %s2366_s26  ;;  %778 = vrot.lane.b32.xlu0 %v2449_v19, %s2366_s26  ;;  %vm4311_vm7 = vmand %vm2640_vm15, %vm2634_vm14  ;;  %vm2751_vm13 = vcmp.ge.s32.totalorder %v49_v32, 1  ;;  %v4314_v19 = vmov 0 }
  0x93   :  { %v908_v62 = vsel %vm4311_vm7, 1.0, %v4242_v2  ;;  %v4315_v19 = vsel %vm2751_vm13, 4294967295, %v4314_v19  ;;  %v913_v9 = vmul.f32 %v905_v45, %v887_v57  ;;  %vm4317_vm3 = vmmov %vm4316_vm2  ;;  %v4319_v32 = vmov 0 }
  0x94   :  { %v926_v6 = vcombine.low %v911_v20, %v912_v58  ;;  %v883_v18 = vpop.permute.xlu1 %882  ;;  %v881_v10 = vpop.permute.xlu0 %880  ;;  %vm4318_vm7 = vmmov %vm4316_vm2  ;;  %v4320_v32 = vsel %vm2765_vm0, 4294967295, %v4319_v32  ;;  %v935_v20 = vrot.slane %v925_v5, %v2733_v61  ;;  %vm2814_vm15 = vcmp.ge.s32.totalorder %v48_v28, 1 }
  0x95   :  { %v892_v11 = vsel %vm4316_vm2, %v883_v18, %v2573_v46  ;;  %v885_v12 = vsel %vm4317_vm3, %v881_v10, %v883_v18  ;;  %v886_v31 = vsel %vm4318_vm7, %v879_v15, %v881_v10  ;;  %vm2771_vm2 = vcmp.ge.s32.totalorder %v50_v37, 1  ;;  %vm142_vm1 = vmand %vm2800_vm12, %vm2806_vm5 }
  0x96   :  { %v942_v13 = vrot.slane %v926_v6, %v2733_v61  ;;  %v916_v14 = vmul.f32 %v908_v62, %v892_v11  ;;  %v914_v16 = vmul.f32 %v906_v63, %v886_v31  ;;  %v915_v17 = vmul.f32 %v907_v0, %v885_v12  ;;  %vm140_vm14 = vmand %vm2765_vm0, %vm2771_vm2 }
  0x97   :  { %v4321_v46 = vmov 0  ;;  %vm2777_vm3 = vcmp.ge.s32.totalorder %v43_v41, 1  ;;  %vm2784_vm7 = vcmp.ge.s32.totalorder %v51_v42, 1  ;;  %v4325_v62 = vmov 0 }
  0x98   :  { %v4322_v46 = vsel %vm2771_vm2, 4294967295, %v4321_v46  ;;  %v927_v45 = vcombine.low %v913_v9, %v914_v16  ;;  %v928_v57 = vcombine.low %v915_v17, %v916_v14  ;;  %v99_v36 = vpop.permute.xlu1 %98  ;;  %v97_v58 = vpop.permute.xlu0 %96  ;;  %v4326_v62 = vsel %vm2784_vm7, 4294967295, %v4325_v62  ;;  %vm138_vm2 = vmand %vm2790_vm6, %vm2814_vm15 }
  0x99   :  { %v4329_v41 = vmov 0  ;;  %v4331_v42 = vmov 0  ;;  %v957_v27 = vcombine.low %v935_v20, %v942_v13  ;;  %v4333_v5 = vmov 0 }
  0x9a   :  { %v4330_v41 = vsel %vm2800_vm12, 4294967295, %v4329_v41  ;;  %v4332_v42 = vsel %vm2806_vm5, 4294967295, %v4331_v42  ;;  %v949_v63 = vrot.slane %v927_v45, %v2733_v61  ;;  %v956_v0 = vrot.slane %v928_v57, %v2733_v61  ;;  %vm4343_vm5 = vmand %vm2745_vm9, %vm2751_vm13 }
  0x9b   :  { %v4334_v5 = vsel %vm2814_vm15, 4294967295, %v4333_v5  ;;  %v4337_v28 = vmov 0  ;;  %v4341_v24 = vmov 0  ;;  %v147_v53 = vsel %vm4343_vm5, 1.0, %v4242_v2  ;;  %vm137_vm15 = vmand %vm2828_vm10, %vm2834_vm11 }
  0x9c   :  { %v4338_v28 = vsel %vm2834_vm11, 4294967295, %v4337_v28  ;;  %v958_v50 = vcombine.low %v949_v63, %v956_v0  ;;  %v103_v6 = vpop.permute.xlu1 %102  ;;  %v101_v18 = vpop.permute.xlu0 %100  ;;  %v4342_v24 = vsel %vm2851_vm4, 4294967295, %v4341_v24  ;;  %v148_v10 = vsel %vm140_vm14, 1.0, %v4242_v2  ;;  %vm4350_vm13 = vmand %vm2777_vm3, %vm2784_vm7 }
  0x9d   :  { %vm2868_vm12 = vcmp.ge.s32.totalorder %v46_v43, 1  ;;  %vm2874_vm0 = vcmp.ge.s32.totalorder %v54_v44, 1  ;;  %v4346_v9 = vmov 0  ;;  %v965_v11 = vrot.slane %v957_v27, %v2733_v61 }
  0x9e   :  { %v4347_v9 = vsel %vm2874_vm0, 4294967295, %v4346_v9  ;;  %v972_v12 = vrot.slane %v958_v50, %v2733_v61  ;;  %vm4348_vm5 = vcmp.lt.s32.totalorder %v2504_v21, 33  ;;  %v149_v43 = vsel %vm4350_vm13, 1.0, %v4242_v2  ;;  %vm144_vm13 = vmand %vm2868_vm12, %vm2874_vm0 }
  0x9f   :  { %v117_v31 = vsel %vm4348_vm5, %v101_v18, %v103_v6  ;;  %vm4349_vm14 = vmmov %vm4348_vm5  ;;  %v150_v44 = vsel %vm142_vm1, 1.0, %v4242_v2  ;;  %v146_v16 = vsel %vm138_vm2, 1.0, %v4242_v2  ;;  %vm4363_vm0 = vnez %v4289_v55 }
  0xa0   :  { %v118_v13 = vsel %vm4349_vm14, %v99_v36, %v101_v18  ;;  %v973_v14 = vcombine.low %v965_v11, %v972_v12  ;;  %vm4351_vm14 = vmmov %vm4348_vm5  ;;  %v107_v20 = vpop.permute.xlu1 %106  ;;  %v105_v45 = vpop.permute.xlu0 %104  ;;  %v156_v27 = vmul.f32 %v148_v10, %v117_v31  ;;  %vm339_vm11 = vcmp.lt.s32.totalorder %v2504_v21, 31 }
  0xa1   :  { %v119_v17 = vsel %vm4351_vm14, %v97_v58, %v99_v36  ;;  %v155_v57 = vmul.f32 %v147_v53, %v118_v13  ;;  %vm4352_vm1 = vmmov %vm4348_vm5  ;;  %v145_v36 = vsel %vm137_vm15, 1.0, %v4242_v2  ;;  %vm4365_vm7 = vnez %v4277_v39 }
  0xa2   :  { %v115_v63 = vsel %vm4352_vm1, %v105_v45, %v107_v20  ;;  %vm4353_vm5 = vmmov %vm4352_vm1  ;;  %976 = vst [vmem:[#allocation2 + $0x40] ss:$8 sm:$0xf] %v973_v14  ;;  %v154_v10 = vmul.f32 %v146_v16, %v119_v17 }
  0xa3   :  { %v116_v0 = vsel %vm4353_vm5, %v103_v6, %v105_v45  ;;  %977 = vst [vmem:[#allocation2 + $0x40] ss:$8 sm:$0xf0] %v973_v14  ;;  %v158_v18 = vmul.f32 %v150_v44, %v115_v63  ;;  %vm4354_vm2 = vmand %vm2845_vm8, %vm2851_vm4  ;;  %v152_v6 = vsel %vm144_vm13, 1.0, %v4242_v2  ;;  %v170_v31 = vcombine.low %v155_v57, %v156_v27 }
  0xa4   :  { %v157_v50 = vmul.f32 %v149_v43, %v116_v0  ;;  %v151_v53 = vsel %vm4354_vm2, 1.0, %v4242_v2  ;;  %v111_v11 = vpop.permute.xlu1 %110  ;;  %v109_v12 = vpop.permute.xlu0 %108  ;;  %vm4355_vm5 = vmmov %vm4352_vm1  ;;  %vm237_vm13 = vcmp.lt.s32.totalorder %v2504_v21, 32  ;;  %vm4360_vm2 = vnez %v4330_v41 }
  0xa5   :  { %v120_v13 = vsel %vm4355_vm5, %v111_v11, %v97_v58  ;;  %vm4356_vm14 = vmmov %vm4352_vm1  ;;  %v186_v17 = vrot.slane %v170_v31, %v2733_v61  ;;  %vm4361_vm5 = vnez %v4281_v47  ;;  %vm4369_vm4 = vnez %v4293_v59 }
  0xa6   :  { %v113_v43 = vsel %vm4356_vm14, %v109_v12, %v111_v11  ;;  %vm4357_vm15 = vmmov %vm4352_vm1  ;;  %v171_v14 = vcombine.low %v157_v50, %v158_v18  ;;  %v153_v45 = vmul.f32 %v145_v36, %v120_v13  ;;  %vm4359_vm1 = vnez %v4320_v32 }
  0xa7   :  { %v114_v44 = vsel %vm4357_vm15, %v107_v20, %v109_v12  ;;  %v160_v0 = vmul.f32 %v152_v6, %v113_v43  ;;  %v4358_v6 = vmov 0.0   ;;  %vm358_vm14 = vmand %vm2745_vm9, %vm4361_vm5  ;;  %vm4362_vm15 = vnez %v4285_v51 }
  0xa8   :  { %v159_v63 = vmul.f32 %v151_v53, %v114_v44  ;;  %v169_v38 = vcombine.low %v153_v45, %v154_v10  ;;  %v224_v2 = vpop.permute.xlu1 %223  ;;  %v222_v16 = vpop.permute.xlu0 %221  ;;  %v193_v58 = vrot.slane %v171_v14, %v2733_v61  ;;  %v248_v10 = vsel %vm2745_vm9, 1.0, %v4358_v6 }
  0xa9   :  { %v999_v57 = vld [vmem:[#allocation2 + $0x48] sm:$0xff]  ;;  %v1001_v27 = vld [vmem:[#allocation2 + $0x58] sm:$0xff]  ;;  %v998_v30 = vld [vmem:[#allocation2 + $0x40] sm:$0xff]  ;;  %v250_v31 = vsel %vm2777_vm3, 1.0, %v4358_v6  ;;  %v251_v13 = vsel %vm4360_vm2, 1.0, %v4358_v6  ;;  %v247_v44 = vsel %vm2790_vm6, 1.0, %v4358_v6  ;;  %v244_v14 = vsel %vm237_vm13, %v222_v16, %v224_v2 }
  0xaa   :  { %v172_v34 = vcombine.low %v159_v63, %v160_v0  ;;  %v179_v11 = vrot.slane %v169_v38, %v2733_v61  ;;  %1038 = vmatprep.subr.mxu0 %v999_v57  ;;  %1109 = vmatprep.subr.mxu1 %v1001_v27  ;;  %v1000_v20 = vld [vmem:[#allocation2 + $0x50] sm:$0xff]  ;;  %v249_v38 = vsel %vm4359_vm1, 1.0, %v4358_v6  ;;  %vm4364_vm9 = vnez %v4297_v3 }
  0xab   :  { %1039 = vmatpush1.msra.mxu0 %v998_v30  ;;  %1110 = vmatpush1.msra.mxu1 %v1000_v20  ;;  %v246_v20 = vsel %vm2828_vm10, 1.0, %v4358_v6  ;;  %vm361_vm5 = vmand %vm4360_vm2, %vm4364_vm9  ;;  %v366_v32 = vsel %vm358_vm14, 1.0, %v4358_v6  ;;  %vm4366_vm2 = vnez %v4271_v33  ;;  %vm4368_vm14 = vnez %v4303_v7 }
  0xac   :  { %v200_v29 = vrot.slane %v172_v34, %v2733_v61  ;;  %v201_v50 = vcombine.low %v179_v11, %v186_v17  ;;  %v228_v36 = vpop.permute.xlu1 %227  ;;  %v226_v53 = vpop.permute.xlu0 %225  ;;  %v575_v33 = vsel %vm4363_vm0, 1.0, %v4358_v6  ;;  %v576_v55 = vsel %vm4364_vm9, 1.0, %v4358_v6 }
  0xad   :  { %v242_v30 = vsel %vm237_vm13, %v226_v53, %v228_v36  ;;  %vm4382_vm9 = vnez %v4283_v48 }
  0xae   :  { %v202_v18 = vcombine.low %v193_v58, %v200_v29  ;;  %v209_v34 = vrot.slane %v201_v50, %v2733_v61  ;;  %v243_v29 = vsel %vm237_vm13, %v224_v2, %v226_v53  ;;  %v257_v17 = vmul.f32 %v249_v38, %v242_v30 }
  0xaf   :  { %v256_v0 = vmul.f32 %v248_v10, %v243_v29  ;;  %v252_v2 = vsel %vm2845_vm8, 1.0, %v4358_v6  ;;  %v253_v50 = vsel %vm2868_vm12, 1.0, %v4358_v6 }
  0xb0   :  { %v216_v12 = vrot.slane %v202_v18, %v2733_v61  ;;  %v232_v45 = vpop.permute.xlu1 %231  ;;  %v230_v63 = vpop.permute.xlu0 %229  ;;  %v255_v18 = vmul.f32 %v247_v44, %v244_v14 }
  0xb1   :  { %v240_v57 = vsel %vm237_vm13, %v230_v63, %v232_v45  ;;  %v241_v27 = vsel %vm237_vm13, %v228_v36, %v230_v63  ;;  %v271_v36 = vcombine.low %v256_v0, %v257_v17 }
  0xb2   :  { %v217_v43 = vcombine.low %v209_v34, %v216_v12  ;;  %v258_v58 = vmul.f32 %v250_v31, %v241_v27  ;;  %v259_v11 = vmul.f32 %v251_v13, %v240_v57 }
  0xb4   :  { %219 = vst [vmem:[#allocation2] ss:$8 sm:$0xf] %v217_v43  ;;  %220 = vst [vmem:[#allocation2] ss:$8 sm:$0xf0] %v217_v43  ;;  %v236_v53 = vpop.permute.xlu1 %235  ;;  %v234_v10 = vpop.permute.xlu0 %233  ;;  %v272_v30 = vcombine.low %v258_v58, %v259_v11 }
  0xb5   :  { %v245_v38 = vsel %vm237_vm13, %v236_v53, %v222_v16  ;;  %v238_v34 = vsel %vm237_vm13, %v234_v10, %v236_v53  ;;  %v239_v12 = vsel %vm237_vm13, %v232_v45, %v234_v10  ;;  %v287_v16 = vrot.slane %v271_v36, %v2733_v61  ;;  %vm359_vm13 = vmand %vm4359_vm1, %vm4362_vm15 }
  0xb6   :  { %v254_v29 = vmul.f32 %v246_v20, %v245_v38  ;;  %v260_v31 = vmul.f32 %v252_v2, %v239_v12  ;;  %v261_v13 = vmul.f32 %v253_v50, %v238_v34  ;;  %v294_v14 = vrot.slane %v272_v30, %v2733_v61  ;;  %vm357_vm1 = vmand %vm2790_vm6, %vm4365_vm7 }
  0xb7   :  { %v367_v11 = vsel %vm359_vm13, 1.0, %v4358_v6  ;;  %vm4367_vm6 = vmand %vm2777_vm3, %vm4363_vm0  ;;  %v365_v10 = vsel %vm357_vm1, 1.0, %v4358_v6  ;;  %vm4374_vm1 = vnez %v4332_v42  ;;  %vm4380_vm0 = vnez %v4274_v35 }
  0xb8   :  { %v270_v43 = vcombine.low %v254_v29, %v255_v18  ;;  %v273_v63 = vcombine.low %v260_v31, %v261_v13  ;;  %v326_v57 = vpop.permute.xlu1 %325  ;;  %v324_v44 = vpop.permute.xlu0 %323  ;;  %v368_v37 = vsel %vm4367_vm6, 1.0, %v4358_v6  ;;  %v369_v18 = vsel %vm361_vm5, 1.0, %v4358_v6  ;;  %vm362_vm13 = vmand %vm2845_vm8, %vm4368_vm14 }
  0xb9   :  { %v346_v36 = vsel %vm339_vm11, %v324_v44, %v326_v57  ;;  %vm363_vm3 = vmand %vm2868_vm12, %vm4369_vm4  ;;  %vm457_vm8 = vcmp.lt.s32.totalorder %v2504_v21, 1  ;;  %vm4373_vm12 = vnez %v4326_v62  ;;  %vm4375_vm6 = vnez %v4334_v5 }
  0xba   :  { %v280_v0 = vrot.slane %v270_v43, %v2733_v61  ;;  %v301_v45 = vrot.slane %v273_v63, %v2733_v61  ;;  %vm4370_vm5 = vmand %vm2828_vm10, %vm4366_vm2  ;;  %v370_v43 = vsel %vm362_vm13, 1.0, %v4358_v6  ;;  %v371_v63 = vsel %vm363_vm3, 1.0, %v4358_v6 }
  0xbb   :  { %v364_v54 = vsel %vm4370_vm5, 1.0, %v4358_v6  ;;  %vm4371_vm10 = vnez %v4315_v19  ;;  %vm4376_vm13 = vnez %v4338_v28  ;;  %vm4377_vm3 = vnez %v4342_v24 }
  0xbc   :  { %v302_v1 = vcombine.low %v280_v0, %v287_v16  ;;  %v303_v17 = vcombine.low %v294_v14, %v301_v45  ;;  %v330_v27 = vpop.permute.xlu1 %329  ;;  %v328_v58 = vpop.permute.xlu0 %327  ;;  %vm4378_vm5 = vnez %v4347_v9 }
  0xbd   :  { %v344_v50 = vsel %vm339_vm11, %v328_v58, %v330_v27  ;;  %v345_v41 = vsel %vm339_vm11, %v326_v57, %v328_v58  ;;  %v373_v57 = vmul.f32 %v365_v10, %v346_v36 }
  0xbe   :  { %v310_v20 = vrot.slane %v302_v1, %v2733_v61  ;;  %v317_v2 = vrot.slane %v303_v17, %v2733_v61  ;;  %v374_v15 = vmul.f32 %v366_v32, %v345_v41  ;;  %v375_v12 = vmul.f32 %v367_v11, %v344_v50 }
  0xc0   :  { %v318_v53 = vcombine.low %v310_v20, %v317_v2  ;;  %v334_v38 = vpop.permute.xlu1 %333  ;;  %v332_v34 = vpop.permute.xlu0 %331  ;;  %v389_v0 = vcombine.low %v374_v15, %v375_v12 }
  0xc1   :  { %v342_v30 = vsel %vm339_vm11, %v332_v34, %v334_v38  ;;  %v343_v29 = vsel %vm339_vm11, %v330_v27, %v332_v34 }
  0xc2   :  { %321 = vst [vmem:[#allocation2 + $0x1] ss:$8 sm:$0xf] %v318_v53  ;;  %322 = vst [vmem:[#allocation2 + $0x1] ss:$8 sm:$0xf0] %v318_v53  ;;  %v376_v31 = vmul.f32 %v368_v37, %v343_v29  ;;  %v377_v13 = vmul.f32 %v369_v18, %v342_v30  ;;  %v405_v50 = vrot.slane %v389_v0, %v2733_v61 }
  0xc4   :  { %v338_v16 = vpop.permute.xlu1 %337  ;;  %v336_v14 = vpop.permute.xlu0 %335  ;;  %v390_v25 = vcombine.low %v376_v31, %v377_v13  ;;  %v470_v31 = vsel %vm4373_vm12, 1.0, %v4358_v6  ;;  %v471_v13 = vsel %vm4374_vm1, 1.0, %v4358_v6 }
  0xc5   :  { %v347_v49 = vsel %vm339_vm11, %v338_v16, %v324_v44  ;;  %v340_v45 = vsel %vm339_vm11, %v336_v14, %v338_v16  ;;  %v341_v1 = vsel %vm339_vm11, %v334_v38, %v336_v14  ;;  %v468_v38 = vsel %vm4371_vm10, 1.0, %v4358_v6 }
  0xc6   :  { %v372_v17 = vmul.f32 %v364_v54, %v347_v49  ;;  %v378_v27 = vmul.f32 %v370_v43, %v341_v1  ;;  %v379_v58 = vmul.f32 %v371_v63, %v340_v45  ;;  %v412_v41 = vrot.slane %v390_v25, %v2733_v61 }
  0xc7   :  { %vm4372_vm11 = vnez %v4322_v46  ;;  %v467_v43 = vsel %vm4375_vm6, 1.0, %v4358_v6 }
  0xc8   :  { %v388_v32 = vcombine.low %v372_v17, %v373_v57  ;;  %v391_v11 = vcombine.low %v378_v27, %v379_v58  ;;  %v444_v20 = vpop.permute.xlu1 %443  ;;  %v442_v2 = vpop.permute.xlu0 %441  ;;  %v469_v34 = vsel %vm4372_vm11, 1.0, %v4358_v6  ;;  %v466_v17 = vsel %vm4376_vm13, 1.0, %v4358_v6 }
  0xc9   :  { %v464_v63 = vsel %vm457_vm8, %v442_v2, %v444_v20  ;;  %v472_v27 = vsel %vm4377_vm3, 1.0, %v4358_v6  ;;  %v473_v58 = vsel %vm4378_vm5, 1.0, %v4358_v6  ;;  %vm4379_vm3 = vnez %v4281_v47 }
  0xca   :  { %v398_v44 = vrot.slane %v388_v32, %v2733_v61  ;;  %v419_v37 = vrot.slane %v391_v11, %v2733_v61  ;;  %v475_v32 = vmul.f32 %v467_v43, %v464_v63 }
  0xcc   :  { %v420_v18 = vcombine.low %v398_v44, %v405_v50  ;;  %v421_v53 = vcombine.low %v412_v41, %v419_v37  ;;  %v448_v10 = vpop.permute.xlu1 %447  ;;  %v446_v36 = vpop.permute.xlu0 %445 }
  0xcd   :  { %v462_v30 = vsel %vm457_vm8, %v446_v36, %v448_v10  ;;  %v463_v29 = vsel %vm457_vm8, %v444_v20, %v446_v36 }
  0xce   :  { %v428_v15 = vrot.slane %v420_v18, %v2733_v61  ;;  %v435_v12 = vrot.slane %v421_v53, %v2733_v61  ;;  %v476_v14 = vmul.f32 %v468_v38, %v463_v29  ;;  %v477_v0 = vmul.f32 %v469_v34, %v462_v30 }
  0xd0   :  { %v436_v54 = vcombine.low %v428_v15, %v435_v12  ;;  %v452_v57 = vpop.permute.xlu1 %451  ;;  %v450_v16 = vpop.permute.xlu0 %449  ;;  %v491_v50 = vcombine.low %v476_v14, %v477_v0 }
  0xd1   :  { %v460_v49 = vsel %vm457_vm8, %v450_v16, %v452_v57  ;;  %v461_v45 = vsel %vm457_vm8, %v448_v10, %v450_v16 }
  0xd2   :  { %439 = vst [vmem:[#allocation2 + $0x2] ss:$8 sm:$0xf] %v436_v54  ;;  %440 = vst [vmem:[#allocation2 + $0x2] ss:$8 sm:$0xf0] %v436_v54  ;;  %v478_v1 = vmul.f32 %v470_v31, %v461_v45  ;;  %v479_v25 = vmul.f32 %v471_v13, %v460_v49  ;;  %v507_v30 = vrot.slane %v491_v50, %v2733_v61 }
  0xd3   :  { %v571_v49 = vsel %vm4366_vm2, 1.0, %v4358_v6  ;;  %vm683_vm2 = vmand %vm4382_vm9, %vm4371_vm10  ;;  %vm4388_vm10 = vnez %v4305_v8 }
  0xd4   :  { %v456_v11 = vpop.permute.xlu1 %455  ;;  %v454_v20 = vpop.permute.xlu0 %453  ;;  %v492_v18 = vcombine.low %v478_v1, %v479_v25  ;;  %v573_v1 = vsel %vm4379_vm3, 1.0, %v4358_v6  ;;  %v574_v25 = vsel %vm4362_vm15, 1.0, %v4358_v6  ;;  %vm4383_vm3 = vnez %v4287_v52 }
  0xd5   :  { %v465_v41 = vsel %vm457_vm8, %v456_v11, %v442_v2  ;;  %v458_v44 = vsel %vm457_vm8, %v454_v20, %v456_v11  ;;  %v459_v37 = vsel %vm457_vm8, %v452_v57, %v454_v20  ;;  %vm4256_vm8 = vcmp.lt.s32.totalorder %v2504_v21, 127 }
  0xd6   :  { %v474_v53 = vmul.f32 %v466_v17, %v465_v41  ;;  %v480_v10 = vmul.f32 %v472_v27, %v459_v37  ;;  %v481_v36 = vmul.f32 %v473_v58, %v458_v44  ;;  %v514_v29 = vrot.slane %v492_v18, %v2733_v61 }
  0xd7   :  { %v572_v57 = vsel %vm4365_vm7, 1.0, %v4358_v6  ;;  %v578_v41 = vsel %vm4369_vm4, 1.0, %v4358_v6  ;;  %v577_v44 = vsel %vm4368_vm14, 1.0, %v4358_v6  ;;  %vm681_vm4 = vmand %vm4380_vm0, %vm4376_vm13  ;;  %vm4381_vm7 = vnez %v4279_v40 }
  0xd8   :  { %v490_v38 = vcombine.low %v474_v53, %v475_v32  ;;  %v493_v34 = vcombine.low %v480_v10, %v481_v36  ;;  %v549_v15 = vpop.permute.xlu1 %548  ;;  %v547_v12 = vpop.permute.xlu0 %546  ;;  %vm682_vm15 = vmand %vm4381_vm7, %vm4375_vm6  ;;  %vm664_vm14 = vcmp.lt.s32.totalorder %v2504_v21, 97  ;;  %vm4384_vm6 = vnez %v4291_v56 }
  0xd9   :  { %v569_v45 = vsel %vm4256_vm8, %v547_v12, %v549_v15  ;;  %v690_v5 = vsel %vm682_vm15, 1.0, %v4358_v6  ;;  %v689_v46 = vsel %vm681_vm4, 1.0, %v4358_v6  ;;  %vm4386_vm13 = vnez %v4299_v4 }
  0xda   :  { %v500_v2 = vrot.slane %v490_v38, %v2733_v61  ;;  %v521_v31 = vrot.slane %v493_v34, %v2733_v61  ;;  %v579_v47 = vmul.f32 %v571_v49, %v569_v45  ;;  %vm686_vm4 = vmand %vm4386_vm13, %vm4374_vm1  ;;  %vm4387_vm15 = vnez %v4342_v24 }
  0xdb   :  { %v795_v35 = vsel %vm4384_vm6, 1.0, %v4358_v6  ;;  %v796_v56 = vsel %vm4386_vm13, 1.0, %v4358_v6 }
  0xdc   :  { %v522_v13 = vcombine.low %v500_v2, %v507_v30  ;;  %v523_v54 = vcombine.low %v514_v29, %v521_v31  ;;  %v553_v43 = vpop.permute.xlu1 %552  ;;  %v551_v63 = vpop.permute.xlu0 %550 }
  0xdd   :  { %v568_v16 = vsel %vm4256_vm8, %v549_v15, %v551_v63  ;;  %v567_v39 = vsel %vm4256_vm8, %v551_v63, %v553_v43 }
  0xde   :  { %v530_v14 = vrot.slane %v522_v13, %v2733_v61  ;;  %v537_v0 = vrot.slane %v523_v54, %v2733_v61  ;;  %v580_v27 = vmul.f32 %v572_v57, %v568_v16  ;;  %v581_v20 = vmul.f32 %v573_v1, %v567_v39 }
  0xdf   :  { %v691_v1 = vsel %vm683_vm2, 1.0, %v4358_v6 }
  0xe0   :  { %v538_v17 = vcombine.low %v530_v14, %v537_v0  ;;  %v557_v58 = vpop.permute.xlu1 %556  ;;  %v555_v32 = vpop.permute.xlu0 %554  ;;  %v595_v37 = vcombine.low %v579_v47, %v580_v27 }
  0xe1   :  { %v566_v11 = vsel %vm4256_vm8, %v553_v43, %v555_v32  ;;  %v565_v50 = vsel %vm4256_vm8, %v555_v32, %v557_v58 }
  0xe2   :  { %541 = vst [vmem:[#allocation2 + $0x3] ss:$8 sm:$0xf] %v538_v17  ;;  %542 = vst [vmem:[#allocation2 + $0x3] ss:$8 sm:$0xf0] %v538_v17  ;;  %v582_v51 = vmul.f32 %v574_v25, %v566_v11  ;;  %v583_v36 = vmul.f32 %v575_v33, %v565_v50  ;;  %v605_v29 = vrot.slane %v595_v37, %v2733_v61 }
  0xe4   :  { %v596_v18 = vcombine.low %v581_v20, %v582_v51  ;;  %v561_v53 = vpop.permute.xlu1 %560  ;;  %v559_v10 = vpop.permute.xlu0 %558  ;;  %v694_v20 = vsel %vm686_vm4, 1.0, %v4358_v6 }
  0xe5   :  { %v570_v38 = vsel %vm4256_vm8, %v561_v53, %v547_v12  ;;  %v563_v59 = vsel %vm4256_vm8, %v559_v10, %v561_v53  ;;  %v564_v34 = vsel %vm4256_vm8, %v557_v58, %v559_v10  ;;  %vm684_vm8 = vmand %vm4383_vm3, %vm4372_vm11  ;;  %vm4385_vm11 = vnez %v4295_v60 }
  0xe6   :  { %v612_v3 = vrot.slane %v596_v18, %v2733_v61  ;;  %v586_v15 = vmul.f32 %v578_v41, %v570_v38  ;;  %v584_v30 = vmul.f32 %v576_v55, %v564_v34  ;;  %v585_v7 = vmul.f32 %v577_v44, %v563_v59  ;;  %vm687_vm3 = vmand %vm4388_vm10, %vm4387_vm15 }
  0xe7   :  { %v692_v25 = vsel %vm684_vm8, 1.0, %v4358_v6  ;;  %vm4389_vm8 = vmand %vm4384_vm6, %vm4373_vm12  ;;  %v695_v50 = vsel %vm687_vm3, 1.0, %v4358_v6  ;;  %vm782_vm12 = vcmp.lt.s32.totalorder %v2504_v21, 96 }
  0xe8   :  { %v597_v2 = vcombine.low %v583_v36, %v584_v30  ;;  %v598_v31 = vcombine.low %v585_v7, %v586_v15  ;;  %v651_v13 = vpop.permute.xlu1 %650  ;;  %v649_v54 = vpop.permute.xlu0 %648  ;;  %v627_v12 = vcombine.low %v605_v29, %v612_v3  ;;  %v693_v32 = vsel %vm4389_vm8, 1.0, %v4358_v6  ;;  %vm4390_vm1 = vmand %vm4385_vm11, %vm4378_vm5 }
  0xe9   :  { %v671_v45 = vsel %vm664_vm14, %v649_v54, %v651_v13  ;;  %v696_v62 = vsel %vm4390_vm1, 1.0, %v4358_v6  ;;  %vm4391_vm5 = vnez %v4287_v52 }
  0xea   :  { %v619_v43 = vrot.slane %v597_v2, %v2733_v61  ;;  %v626_v63 = vrot.slane %v598_v31, %v2733_v61  ;;  %v635_v19 = vrot.slane %v627_v12, %v2733_v61  ;;  %v697_v33 = vmul.f32 %v689_v46, %v671_v45 }
  0xec   :  { %v628_v57 = vcombine.low %v619_v43, %v626_v63  ;;  %v655_v16 = vpop.permute.xlu1 %654  ;;  %v653_v14 = vpop.permute.xlu0 %652  ;;  %v792_v43 = vsel %vm4381_vm7, 1.0, %v4358_v6  ;;  %vm4392_vm7 = vcmp.lt.s32.totalorder %v2504_v21, 127 }
  0xed   :  { %v670_v0 = vsel %vm664_vm14, %v651_v13, %v653_v14  ;;  %v669_v39 = vsel %vm664_vm14, %v653_v14, %v655_v16  ;;  %v791_v14 = vsel %vm4380_vm0, 1.0, %v4358_v6  ;;  %vm1006_vm0 = vcmask 130048   ;;  %vm4394_vm2 = vmmov %vm4392_vm7 }
  0xee   :  { %v642_v49 = vrot.slane %v628_v57, %v2733_v61  ;;  %v698_v17 = vmul.f32 %v690_v5, %v670_v0  ;;  %v699_v11 = vmul.f32 %v691_v1, %v669_v39  ;;  %v793_v0 = vsel %vm4382_vm9, 1.0, %v4358_v6  ;;  %vm4393_vm9 = vmmov %vm4392_vm7 }
  0xef   :  { %vm4396_vm3 = vmmov %vm4394_vm2 }
  0xf0   :  { %v643_v28 = vcombine.low %v635_v19, %v642_v49  ;;  %v659_v27 = vpop.permute.xlu1 %658  ;;  %v657_v58 = vpop.permute.xlu0 %656  ;;  %v713_v51 = vcombine.low %v697_v33, %v698_v17  ;;  %v794_v19 = vsel %vm4391_vm5, 1.0, %v4358_v6  ;;  %v798_v17 = vsel %vm4385_vm11, 1.0, %v4358_v6  ;;  %vm4397_vm6 = vmmov %vm4394_vm2 }
  0xf1   :  { %v668_v42 = vsel %vm664_vm14, %v655_v16, %v657_v58  ;;  %v667_v24 = vsel %vm664_vm14, %v657_v58, %v659_v27  ;;  %vm4399_vm11 = vmmov %vm4394_vm2  ;;  %vm4261_vm5 = vcmp.lt.s32.totalorder %v2504_v21, 62 }
  0xf2   :  { %646 = vst [vmem:[#allocation2 + $0x5] ss:$8 sm:$0xf] %v643_v28  ;;  %647 = vst [vmem:[#allocation2 + $0x5] ss:$8 sm:$0xf0] %v643_v28  ;;  %v700_v47 = vmul.f32 %v692_v25, %v668_v42  ;;  %v701_v37 = vmul.f32 %v693_v32, %v667_v24  ;;  %v723_v34 = vrot.slane %v713_v51, %v2733_v61 }
  0xf4   :  { %v714_v41 = vcombine.low %v699_v11, %v700_v47  ;;  %v663_v55 = vpop.permute.xlu1 %662  ;;  %v661_v44 = vpop.permute.xlu0 %660 }
  0xf5   :  { %v672_v18 = vsel %vm664_vm14, %v663_v55, %v649_v54  ;;  %v665_v53 = vsel %vm664_vm14, %v661_v44, %v663_v55  ;;  %v666_v9 = vsel %vm664_vm14, %v659_v27, %v661_v44  ;;  %v797_v27 = vsel %vm4388_vm10, 1.0, %v4358_v6  ;;  %vm4395_vm14 = vmmov %vm4394_vm2 }
  0xf6   :  { %v730_v10 = vrot.slane %v714_v41, %v2733_v61  ;;  %v704_v36 = vmul.f32 %v696_v62, %v672_v18  ;;  %v702_v38 = vmul.f32 %v694_v20, %v666_v9  ;;  %v703_v59 = vmul.f32 %v695_v50, %v665_v53  ;;  %vm4398_vm10 = vmmov %vm4394_vm2 }
  0xf8   :  { %v715_v3 = vcombine.low %v701_v37, %v702_v38  ;;  %v716_v15 = vcombine.low %v703_v59, %v704_v36  ;;  %v769_v30 = vpop.permute.xlu1 %768  ;;  %v767_v7 = vpop.permute.xlu0 %766  ;;  %v745_v29 = vcombine.low %v723_v34, %v730_v10  ;;  %v989_v36 = vld [vmem:[%s4192_s2 + $0x10] sm:$0xff] }
  0xf9   :  { %v789_v5 = vsel %vm782_vm12, %v767_v7, %v769_v30 }
  0xfa   :  { %v737_v2 = vrot.slane %v715_v3, %v2733_v61  ;;  %v744_v31 = vrot.slane %v716_v15, %v2733_v61  ;;  %v753_v57 = vrot.slane %v745_v29, %v2733_v61  ;;  %v799_v48 = vmul.f32 %v791_v14, %v789_v5  ;;  %v1005_v15 = vld [vmem:[#allocation2 + $0x78] sm:$0xff] }
  0xfc   :  { %v746_v13 = vcombine.low %v737_v2, %v744_v31  ;;  %v773_v54 = vpop.permute.xlu1 %772  ;;  %v771_v12 = vpop.permute.xlu0 %770 }
  0xfd   :  { %v788_v63 = vsel %vm782_vm12, %v769_v30, %v771_v12  ;;  %v787_v40 = vsel %vm782_vm12, %v771_v12, %v773_v54  ;;  %v1002_v30 = vld [vmem:[#allocation2 + $0x60] sm:$0xff] }
  0xfe   :  { %v760_v16 = vrot.slane %v746_v13, %v2733_v61  ;;  %v800_v46 = vmul.f32 %v792_v43, %v788_v63  ;;  %v801_v25 = vmul.f32 %v793_v0, %v787_v40 }
 0x100   :  { %v761_v49 = vcombine.low %v753_v57, %v760_v16  ;;  %v777_v45 = vpop.permute.xlu1 %776  ;;  %v775_v1 = vpop.permute.xlu0 %774  ;;  %v815_v58 = vcombine.low %v799_v48, %v800_v46 }
 0x101   :  { %v786_v39 = vsel %vm782_vm12, %v773_v54, %v775_v1  ;;  %v785_v28 = vsel %vm782_vm12, %v775_v1, %v777_v45 }
 0x102   :  { %764 = vst [vmem:[#allocation2 + $0x6] ss:$8 sm:$0xf] %v761_v49  ;;  %765 = vst [vmem:[#allocation2 + $0x6] ss:$8 sm:$0xf0] %v761_v49  ;;  %v802_v52 = vmul.f32 %v794_v19, %v786_v39  ;;  %v803_v11 = vmul.f32 %v795_v35, %v785_v28  ;;  %v825_v50 = vrot.slane %v815_v58, %v2733_v61 }
 0x104   :  { %v816_v32 = vcombine.low %v801_v25, %v802_v52  ;;  %v781_v42 = vpop.permute.xlu1 %780  ;;  %v779_v33 = vpop.permute.xlu0 %778 }
 0x105   :  { %v790_v24 = vsel %vm782_vm12, %v781_v42, %v767_v7  ;;  %v783_v60 = vsel %vm782_vm12, %v779_v33, %v781_v42  ;;  %v784_v47 = vsel %vm782_vm12, %v777_v45, %v779_v33  ;;  %v1004_v7 = vld [vmem:[#allocation2 + $0x70] sm:$0xff] }
 0x106   :  { %v832_v4 = vrot.slane %v816_v32, %v2733_v61  ;;  %v806_v62 = vmul.f32 %v798_v17, %v790_v24  ;;  %v804_v20 = vmul.f32 %v796_v56, %v784_v47  ;;  %v805_v8 = vmul.f32 %v797_v27, %v783_v60 }
 0x108   :  { %v817_v51 = vcombine.low %v803_v11, %v804_v20  ;;  %v818_v41 = vcombine.low %v805_v8, %v806_v62  ;;  %v847_v55 = vcombine.low %v825_v50, %v832_v4 }
 0x10a   :  { %v839_v44 = vrot.slane %v817_v51, %v2733_v61  ;;  %v846_v37 = vrot.slane %v818_v41, %v2733_v61  ;;  %v855_v53 = vrot.slane %v847_v55, %v2733_v61 }
 0x10c   :  { %v848_v18 = vcombine.low %v839_v44, %v846_v37 }
 0x10e   :  { %v862_v9 = vrot.slane %v848_v18, %v2733_v61  ;;  %v1003_v61 = vld [vmem:[#allocation2 + $0x68] sm:$0xff] }
 0x110   :  { %v863_v10 = vcombine.low %v855_v53, %v862_v9 }
 0x112   :  { %866 = vst [vmem:[#allocation2 + $0x7] ss:$8 sm:$0xf] %v863_v10  ;;  %867 = vst [vmem:[#allocation2 + $0x7] ss:$8 sm:$0xf0] %v863_v10 }
 0x119   :  { %v991_v38 = vld [vmem:[#allocation2 + $0x8] sm:$0xff]  ;;  %v993_v59 = vld [vmem:[#allocation2 + $0x18] sm:$0xff]  ;;  %v990_v34 = vld [vmem:[#allocation2] sm:$0xff] }
 0x11a   :  { %1040 = vmatprep.subr.mxu0 %v991_v38  ;;  %1111 = vmatprep.subr.mxu1 %v993_v59  ;;  %v992_v3 = vld [vmem:[#allocation2 + $0x10] sm:$0xff]  ;;  %v995_v29 = vld [vmem:[#allocation2 + $0x28] sm:$0xff]  ;;  %v997_v2 = vld [vmem:[#allocation2 + $0x38] sm:$0xff] }
 0x11b   :  { %1041 = vmatpush1.msra.mxu0 %v990_v34  ;;  %1112 = vmatpush1.msra.mxu1 %v992_v3  ;;  %v994_v31 = vld [vmem:[#allocation2 + $0x20] sm:$0xff]  ;;  %v996_v13 = vld [vmem:[#allocation2 + $0x30] sm:$0xff] }
 0x11c   :  { %2279 = vmatmul.mubr.msk.f32.vlgmr.msra.gmra.mxu0 %vm1006_vm0, %v989_v36  ;;  %2280 = vmatmul.mubr.msk.f32.vlgmr.msra.gmra.mxu1 %vm1006_vm0, %v989_v36 }
 0x11d   :  { %1180 = vmatprep.subr.mxu0 %v1003_v61  ;;  %1251 = vmatprep.subr.mxu1 %v1005_v15 }
 0x11e   :  { %1181 = vmatpush1.msra.mxu0 %v1002_v30  ;;  %1252 = vmatpush1.msra.mxu1 %v1004_v7 }
 0x11f   :  { %1182 = vmatprep.subr.mxu0 %v995_v29  ;;  %1253 = vmatprep.subr.mxu1 %v997_v2 }
 0x120   :  { %1183 = vmatpush1.msra.mxu0 %v994_v31  ;;  %1216 = vmatprep.mubr.f32.mxu0 %v4358_v6 }
 0x121   :  { %1254 = vmatpush1.msra.mxu1 %v996_v13  ;;  %2281 = vmatmul.mubr.msk.f32.vlgmr.msra.gmra.mxu0 %vm1006_vm0, %v989_v36 }
 0x122   :  { %1287 = vmatprep.mubr.f32.mxu1 %v4358_v6  ;;  %1943 = vmatprep.mubr.f32.mxu0 %v4358_v6 }
 0x123   :  { %2282 = vmatmul.mubr.msk.f32.vlgmr.msra.gmra.mxu1 %vm1006_vm0, %v989_v36  ;;  %vm4265_vm0 = vcmp.lt.s32.totalorder %v2504_v21, 64 }
 0x124   :  { %2020 = vmatprep.mubr.f32.mxu1 %v4358_v6 }
 0x1dc   :  { %v1076_v54 = vpop.f32.mrf.mxu0  ;;  %v1147_v12 = vpop.f32.mrf.mxu1 }
 0x1dd   :  { %v1294_v43 = vmax.f32 %v1076_v54, 0.0  ;;  %v1296_v63 = vmax.f32 %v1147_v12, 0.0 }
 0x1de   :  { %v1078_v57 = vpop.f32.mrf.mxu0  ;;  %v1149_v5 = vpop.f32.mrf.mxu1 }
 0x1df   :  { %1306 = vrot.lane.b32.xlu1 %v1296_v63, %s2364_s24  ;;  %1302 = vrot.lane.b32.xlu0 %v1294_v43, %s2364_s24  ;;  %v1295_v16 = vmax.f32 %v1078_v57, 0.0  ;;  %v1297_v46 = vmax.f32 %v1149_v5, 0.0  ;;  %v1867_v5 = vld [vmem:[#allocation3 + $0x258] sm:$0xff] }
 0x1e0   :  { %1968 = vmatprep.subr.mxu1 %v1867_v5 }
 0x1e1   :  { %v1218_v14 = vpop.f32.mrf.mxu0 }
 0x1e2   :  { %v1298_v0 = vmax.f32 %v1218_v14, 0.0  ;;  %v1864_v14 = vld [vmem:[#allocation3 + $0x240] sm:$0xff] }
 0x1e3   :  { %1304 = vrot.lane.b32.xlu0 %v1295_v16, %s2364_s24  ;;  %v1220_v40 = vpop.f32.mrf.mxu0  ;;  %v1289_v19 = vpop.f32.mrf.mxu1 }
 0x1e4   :  { %1310 = vrot.lane.b32.xlu1 %v1298_v0, %s2364_s24  ;;  %v1299_v49 = vmax.f32 %v1220_v40, 0.0  ;;  %v1300_v1 = vmax.f32 %v1289_v19, 0.0  ;;  %v1375_v40 = vand.u32 63, %v2511_v22  ;;  %v1374_v19 = vand.u32 63, %v2504_v21 }
 0x1e5   :  { %v1291_v45 = vpop.f32.mrf.mxu1 }
 0x1e6   :  { %v1301_v35 = vmax.f32 %v1291_v45, 0.0  ;;  %v1366_v45 = vshra.s32 %v2504_v21, 6 }
 0x1e7   :  { %1308 = vrot.lane.b32.xlu0 %v1297_v46, %s2364_s24 }
 0x1e8   :  { %1312 = vrot.lane.b32.xlu1 %v1299_v49, %s2364_s24  ;;  %vm3422_vm8 = vcmp.le.s32.totalorder %v1366_v45, 14 }
 0x1eb   :  { %1314 = vrot.lane.b32.xlu0 %v1300_v1, %s2364_s24 }
 0x1ec   :  { %1316 = vrot.lane.b32.xlu1 %v1301_v35, %s2364_s24 }
 0x251   :  { %v1307_v39 = vpop.permute.xlu1 %1306  ;;  %v1303_v48 = vpop.permute.xlu0 %1302 }
 0x255   :  { %v1305_v25 = vpop.permute.xlu0 %1304 }
 0x256   :  { %v1323_v28 = vsel %vm4392_vm7, %v1305_v25, %v1307_v39  ;;  %v1311_v52 = vpop.permute.xlu1 %1310  ;;  %v1324_v11 = vsel %vm4395_vm14, %v1303_v48, %v1305_v25 }
 0x257   :  { %v1327_v17 = vmax.f32 %v1295_v16, %v1323_v28  ;;  %v1326_v4 = vmax.f32 %v1294_v43, %v1324_v11 }
 0x259   :  { %1336 = vrot.lane.b32.xlu0 %v1327_v17, %s2366_s26  ;;  %v1309_v56 = vpop.permute.xlu0 %1308 }
 0x25a   :  { %v1321_v27 = vsel %vm4393_vm9, %v1309_v56, %v1311_v52  ;;  %v1322_v58 = vsel %vm4394_vm2, %v1307_v39, %v1309_v56  ;;  %v1313_v32 = vpop.permute.xlu1 %1312 }
 0x25b   :  { %v1328_v42 = vmax.f32 %v1296_v63, %v1322_v58  ;;  %v1329_v33 = vmax.f32 %v1297_v46, %v1321_v27  ;;  %v1320_v24 = vsel %vm4396_vm3, %v1311_v52, %v1313_v32  ;;  %v1865_v63 = vld [vmem:[#allocation3 + $0x248] sm:$0xff]  ;;  %v3409_v46 = vshra.s32 %v1375_v40, 1 }
 0x25c   :  { %v1330_v62 = vmax.f32 %v1298_v0, %v1320_v24  ;;  %1891 = vmatprep.subr.mxu0 %v1865_v63  ;;  %v1866_v0 = vld [vmem:[#allocation3 + $0x250] sm:$0xff]  ;;  %v1376_v58 = vand.u32 63, %v2514_v23  ;;  %vm4259_vm3 = vcmp.lt.s32.totalorder %v2504_v21, 66 }
 0x25d   :  { %v1315_v60 = vpop.permute.xlu0 %1314  ;;  %1340 = vrot.lane.b32.xlu0 %v1329_v33, %s2366_s26  ;;  %1338 = vrot.lane.b32.xlu1 %v1328_v42, %s2366_s26  ;;  %vm1538_vm13 = vcmp.le.s32.totalorder %v3409_v46, 14  ;;  %vm1424_vm7 = vcmp.ge.s32.totalorder %v3409_v46, 1 }
 0x25e   :  { %v1317_v47 = vpop.permute.xlu1 %1316  ;;  %v1319_v20 = vsel %vm4397_vm6, %v1313_v32, %v1315_v60  ;;  %1892 = vmatpush1.msra.mxu0 %v1864_v14  ;;  %1969 = vmatpush1.msra.mxu1 %v1866_v0  ;;  %vm4258_vm6 = vcmp.lt.s32.totalorder %v2504_v21, 126 }
 0x25f   :  { %v1325_v8 = vsel %vm4398_vm10, %v1317_v47, %v1303_v48  ;;  %v1331_v50 = vmax.f32 %v1299_v49, %v1319_v20  ;;  %v1318_v41 = vsel %vm4399_vm11, %v1315_v60, %v1317_v47  ;;  %v1367_v49 = vshra.s32 %v2511_v22, 6 }
 0x260   :  { %v1333_v51 = vmax.f32 %v1301_v35, %v1325_v8  ;;  %v1332_v55 = vmax.f32 %v1300_v1, %v1318_v41  ;;  %v3412_v1 = vshra.s32 %v1374_v19, 1  ;;  %v3480_v20 = vshra.s32 %v1376_v58, 1 }
 0x261   :  { %1334 = vrot.lane.b32.xlu1 %v1326_v4, %s2366_s26  ;;  %1342 = vrot.lane.b32.xlu0 %v1330_v62, %s2366_s26  ;;  %vm3414_vm15 = vcmp.ge.s32.totalorder %v1367_v49, 1 }
 0x262   :  { %vm1537_vm4 = vcmp.le.s32.totalorder %v3412_v1, 14  ;;  %vm1546_vm1 = vmand %vm3414_vm15, %vm1538_vm13  ;;  %v1489_v52 = vsel %vm3414_vm15, 1.0, %v4358_v6  ;;  %vm4257_vm9 = vcmp.ge.s32.totalorder %v3412_v1, 1  ;;  %vm1539_vm11 = vcmp.le.s32.totalorder %v3480_v20, 14 }
 0x263   :  { %v1554_v25 = vsel %vm1546_vm1, 1.0, %v4358_v6  ;;  %vm1432_vm2 = vmand %vm3414_vm15, %vm1424_vm7  ;;  %vm3504_vm15 = vcmp.le.s32.totalorder %v1367_v49, 14  ;;  %v1660_v49 = vsel %vm1538_vm13, 1.0, %v4358_v6 }
 0x264   :  { %vm1691_vm14 = vmand %vm3422_vm8, %vm4257_vm9  ;;  %v1440_v8 = vsel %vm1432_vm2, 1.0, %v4358_v6  ;;  %vm1425_vm2 = vcmp.ge.s32.totalorder %v3480_v20, 1 }
 0x265   :  { %1344 = vrot.lane.b32.xlu1 %v1331_v50, %s2366_s26  ;;  %1348 = vrot.lane.b32.xlu0 %v1333_v51, %s2366_s26 }
 0x269   :  { %1346 = vrot.lane.b32.xlu1 %v1332_v55, %s2366_s26 }
 0x2cb   :  { %v1337_v44 = vpop.permute.xlu0 %1336 }
 0x2cf   :  { %v1341_v37 = vpop.permute.xlu0 %1340  ;;  %v1339_v18 = vpop.permute.xlu1 %1338 }
 0x2d0   :  { %v1354_v53 = vsel %vm782_vm12, %v1339_v18, %v1341_v37  ;;  %v1355_v9 = vsel %vm782_vm12, %v1337_v44, %v1339_v18  ;;  %v4421_v18 = vld [vmem:[#allocation11_spill] sm:$0xff] }
 0x2d1   :  { %v3326_v10 = vmax.f32 %v1327_v17, %v1355_v9  ;;  %v3328_v36 = vmax.f32 %v1328_v42, %v1354_v53  ;;  %v1723_v17 = vsel %vm3422_vm8, 1.0, %v4358_v6 }
 0x2d3   :  { %v1343_v38 = vpop.permute.xlu0 %1342  ;;  %1465 = vrot.lane.b32.xlu1 %v3326_v10, %s2356_s16  ;;  %1514 = vrot.lane.b32.xlu0 %v3326_v10, %s2368_s29  ;;  %v1335_v59 = vpop.permute.xlu1 %1334 }
 0x2d4   :  { %v1353_v34 = vsel %vm782_vm12, %v1341_v37, %v1343_v38  ;;  %v1356_v3 = vsel %vm782_vm12, %v1335_v59, %v1337_v44 }
 0x2d5   :  { %v3338_v61 = vmax.f32 %v1329_v33, %v1353_v34  ;;  %v3340_v15 = vmax.f32 %v1326_v4, %v1356_v3  ;;  %v1377_v34 = vand.u32 63, %v2519_v26 }
 0x2d7   :  { %v1349_v30 = vpop.permute.xlu0 %1348  ;;  %1463 = vrot.lane.b32.xlu1 %v3340_v15, %s2356_s16  ;;  %1512 = vrot.lane.b32.xlu0 %v3340_v15, %s2368_s29  ;;  %v1345_v7 = vpop.permute.xlu1 %1344 }
 0x2d8   :  { %v1357_v29 = vsel %vm782_vm12, %v1349_v30, %v1335_v59  ;;  %v1352_v2 = vsel %vm782_vm12, %v1343_v38, %v1345_v7  ;;  %v1603_v59 = vsel %vm1424_vm7, 1.0, %v4358_v6 }
 0x2d9   :  { %v1365_v31 = vmax.f32 %v1333_v51, %v1357_v29  ;;  %v1362_v13 = vmax.f32 %v1330_v62, %v1352_v2  ;;  %v1368_v62 = vshra.s32 %v2514_v23, 6  ;;  %v1659_v51 = vsel %vm1537_vm4, 1.0, %v4358_v6 }
 0x2db   :  { %1633 = vst [vmem:[#allocation3 + $0x138] sm:$0xff] %v1365_v31  ;;  %1630 = vst [vmem:[#allocation3 + $0x120] sm:$0xff] %v1362_v13  ;;  %1636 = vrot.lane.b32.xlu1 %v3326_v10, %s2369_s30  ;;  %1392 = vrot.lane.b32.xlu0 %v3326_v10, %s2370_s4  ;;  %v1347_v54 = vpop.permute.xlu1 %1346  ;;  %vm3493_vm10 = vcmp.ge.s32.totalorder %v1368_v62, 1 }
 0x2dc   :  { %v1350_v12 = vsel %vm782_vm12, %v1347_v54, %v1349_v30  ;;  %v1351_v43 = vsel %vm782_vm12, %v1345_v7, %v1347_v54  ;;  %vm1747_vm12 = vmand %vm3422_vm8, %vm1537_vm4  ;;  %vm4260_vm8 = vcmp.lt.s32.totalorder %v2504_v21, 2  ;;  %v4408_v7 = vld [vmem:[#allocation10_spill] sm:$0xff]  ;;  %v1724_v54 = vsel %vm3504_vm15, 1.0, %v4358_v6 }
 0x2dd   :  { %v1363_v57 = vmax.f32 %v1331_v50, %v1351_v43  ;;  %v1364_v16 = vmax.f32 %v1332_v55, %v1350_v12  ;;  %v1755_v28 = vsel %vm1747_vm12, 1.0, %v4358_v6  ;;  %v1699_v50 = vsel %vm1691_vm14, 1.0, %v4358_v6  ;;  %vm1547_vm1 = vmand %vm3493_vm10, %vm1539_vm11 }
 0x2de   :  { %vm1748_vm12 = vmand %vm3504_vm15, %vm1538_vm13  ;;  %v1378_v29 = vand.u32 63, %v4408_v7  ;;  %v1555_v12 = vsel %vm1547_vm1, 1.0, %v4358_v6  ;;  %v1370_v0 = vshra.s32 %v4408_v7, 6 }
 0x2df   :  { %1631 = vst [vmem:[#allocation3 + $0x128] sm:$0xff] %v1363_v57  ;;  %1632 = vst [vmem:[#allocation3 + $0x130] sm:$0xff] %v1364_v16  ;;  %1634 = vrot.lane.b32.xlu1 %v3340_v15, %s2369_s30  ;;  %1390 = vrot.lane.b32.xlu0 %v3340_v15, %s2370_s4  ;;  %v1756_v43 = vsel %vm1748_vm12, 1.0, %v4358_v6 }
 0x2e0   :  { %vm3546_vm14 = vmand %vm3493_vm10, %vm1425_vm2  ;;  %v3558_v40 = vshra.s32 %v1378_v29, 1 }
 0x2e1   :  { %vm1692_vm1 = vmand %vm3504_vm15, %vm1424_vm7  ;;  %vm3592_vm15 = vcmp.ge.s32.totalorder %v1370_v0, 1 }
 0x2e2   :  { %vm4264_vm12 = vcmp.le.s32.totalorder %v3558_v40, 14 }
 0x2e3   :  { %1579 = vrot.lane.b32.xlu1 %v3326_v10, %s2371_s5  ;;  %1577 = vrot.lane.b32.xlu0 %v3340_v15, %s2371_s5 }
 0x2e7   :  { %1516 = vrot.lane.b32.xlu1 %v3328_v36, %s2368_s29  ;;  %1467 = vrot.lane.b32.xlu0 %v3328_v36, %s2356_s16 }
 0x2eb   :  { %1394 = vrot.lane.b32.xlu1 %v3328_v36, %s2370_s4  ;;  %1638 = vrot.lane.b32.xlu0 %v3328_v36, %s2369_s30 }
 0x2ef   :  { %1581 = vrot.lane.b32.xlu0 %v3328_v36, %s2371_s5  ;;  %1520 = vrot.lane.b32.xlu1 %v1362_v13, %s2368_s29 }
 0x2f3   :  { %1518 = vrot.lane.b32.xlu0 %v3338_v61, %s2368_s29  ;;  %1469 = vrot.lane.b32.xlu1 %v3338_v61, %s2356_s16 }
 0x2f7   :  { %1471 = vrot.lane.b32.xlu0 %v1362_v13, %s2356_s16  ;;  %1398 = vrot.lane.b32.xlu1 %v1362_v13, %s2370_s4 }
 0x2fb   :  { %1396 = vrot.lane.b32.xlu0 %v3338_v61, %s2370_s4  ;;  %1642 = vrot.lane.b32.xlu1 %v1362_v13, %s2369_s30 }
 0x2ff   :  { %1640 = vrot.lane.b32.xlu0 %v3338_v61, %s2369_s30  ;;  %1526 = vrot.lane.b32.xlu1 %v1365_v31, %s2368_s29 }
 0x303   :  { %1591 = vrot.lane.b32.xlu0 %v1365_v31, %s2371_s5  ;;  %1583 = vrot.lane.b32.xlu1 %v3338_v61, %s2371_s5 }
 0x307   :  { %1477 = vrot.lane.b32.xlu0 %v1365_v31, %s2356_s16  ;;  %1404 = vrot.lane.b32.xlu1 %v1365_v31, %s2370_s4 }
 0x30b   :  { %1522 = vrot.lane.b32.xlu0 %v1363_v57, %s2368_s29  ;;  %1524 = vrot.lane.b32.xlu1 %v1364_v16, %s2368_s29 }
 0x30f   :  { %1473 = vrot.lane.b32.xlu0 %v1363_v57, %s2356_s16  ;;  %1475 = vrot.lane.b32.xlu1 %v1364_v16, %s2356_s16 }
 0x313   :  { %1400 = vrot.lane.b32.xlu0 %v1363_v57, %s2370_s4  ;;  %1402 = vrot.lane.b32.xlu1 %v1364_v16, %s2370_s4 }
 0x317   :  { %1644 = vrot.lane.b32.xlu0 %v1363_v57, %s2369_s30  ;;  %1646 = vrot.lane.b32.xlu1 %v1364_v16, %s2369_s30 }
 0x31b   :  { %1585 = vrot.lane.b32.xlu0 %v1362_v13, %s2371_s5  ;;  %1587 = vrot.lane.b32.xlu1 %v1363_v57, %s2371_s5  ;;  %v1490_v13 = vsel %vm3493_vm10, 1.0, %v4358_v6  ;;  %v1369_v57 = vshra.s32 %v2519_v26, 6  ;;  %vm3569_vm10 = vcmp.le.s32.totalorder %v1368_v62, 14 }
 0x31d   :  { %vm3581_vm7 = vcmp.ge.s32.totalorder %v1369_v57, 1 }
 0x31f   :  { %1648 = vrot.lane.b32.xlu0 %v1365_v31, %s2369_s30  ;;  %1589 = vrot.lane.b32.xlu1 %v1364_v16, %s2371_s5  ;;  %v3551_v16 = vshra.s32 %v1377_v34, 1 }
 0x321   :  { %vm1540_vm13 = vcmp.le.s32.totalorder %v3551_v16, 14 }
 0x322   :  { %vm1548_vm9 = vmand %vm3581_vm7, %vm1540_vm13  ;;  %v1662_v20 = vsel %vm1540_vm13, 1.0, %v4358_v6 }
 0x323   :  { %v1556_v29 = vsel %vm1548_vm9, 1.0, %v4358_v6  ;;  %vm4263_vm9 = vcmp.ge.s32.totalorder %v3558_v40, 1 }
 0x345   :  { %v3430_v22 = vpop.permute.xlu0 %1514  ;;  %v3432_v48 = vpop.permute.xlu1 %1465 }
 0x349   :  { %v3448_v56 = vpop.permute.xlu0 %1512  ;;  %v3450_v27 = vpop.permute.xlu1 %1463 }
 0x34a   :  { %v1535_v32 = vsel %vm4261_vm5, %v3448_v56, %v3430_v22  ;;  %v1486_v42 = vsel %vm4265_vm0, %v3450_v27, %v3432_v48 }
 0x34b   :  { %v3463_v33 = vmul.f32 %v1554_v25, %v1535_v32  ;;  %v3465_v11 = vmul.f32 %v1755_v28, %v1535_v32  ;;  %v3467_v24 = vmul.f32 %v1489_v52, %v1486_v42  ;;  %v3469_v60 = vmul.f32 %v1723_v17, %v1486_v42 }
 0x34d   :  { %v1393_v47 = vpop.permute.xlu0 %1392  ;;  %v1637_v4 = vpop.permute.xlu1 %1636 }
 0x351   :  { %v3489_v41 = vpop.permute.xlu0 %1390  ;;  %v3491_v55 = vpop.permute.xlu1 %1634 }
 0x352   :  { %v1413_v44 = vsel %vm4259_vm3, %v3489_v41, %v1393_v47  ;;  %v1657_v37 = vsel %vm4258_vm6, %v3491_v55, %v1637_v4 }
 0x353   :  { %v3508_v53 = vmul.f32 %v1440_v8, %v1413_v44  ;;  %v1707_v9 = vmul.f32 %v1699_v50, %v1413_v44  ;;  %v3510_v38 = vmul.f32 %v1659_v51, %v1657_v37 }
 0x355   :  { %v3521_v3 = vpop.permute.xlu0 %1577  ;;  %v1580_v30 = vpop.permute.xlu1 %1579 }
 0x356   :  { %v1600_v2 = vsel %vm4260_vm8, %v3521_v3, %v1580_v30 }
 0x357   :  { %v3532_v31 = vmul.f32 %v1603_v59, %v1600_v2  ;;  %v1381_v59 = vand.u32 63, %v4421_v18 }
 0x359   :  { %v1468_v14 = vpop.permute.xlu0 %1467  ;;  %v1517_v5 = vpop.permute.xlu1 %1516 }
 0x35a   :  { %v1485_v19 = vsel %vm4265_vm0, %v3432_v48, %v1468_v14  ;;  %v1534_v26 = vsel %vm4261_vm5, %v3430_v22, %v1517_v5  ;;  %v1441_v48 = vsel %vm3546_vm14, 1.0, %v4358_v6  ;;  %v1700_v22 = vsel %vm1692_vm1, 1.0, %v4358_v6  ;;  %vm3611_vm1 = vmand %vm3569_vm10, %vm1539_vm11 }
 0x35b   :  { %v3573_v39 = vmul.f32 %v1490_v13, %v1485_v19  ;;  %v1732_v25 = vmul.f32 %v1724_v54, %v1485_v19  ;;  %v3575_v28 = vmul.f32 %v1555_v12, %v1534_v26  ;;  %v1764_v52 = vmul.f32 %v1756_v43, %v1534_v26 }
 0x35c   :  { %vm3603_vm14 = vcmp.le.s32.totalorder %v1369_v57, 14  ;;  %v1725_v54 = vsel %vm3569_vm10, 1.0, %v4358_v6  ;;  %v1373_v43 = vshra.s32 %v4421_v18, 6 }
 0x35d   :  { %v3586_v46 = vpop.permute.xlu0 %1638  ;;  %v3588_v58 = vpop.permute.xlu1 %1394  ;;  %1893 = vmatprep.subr.mxu0 %v1764_v52  ;;  %v1492_v52 = vsel %vm3592_vm15, 1.0, %v4358_v6 }
 0x35e   :  { %v1656_v42 = vsel %vm4258_vm6, %v1637_v4, %v3586_v46  ;;  %v1412_v62 = vsel %vm4259_vm3, %v1393_v47, %v3588_v58  ;;  %1894 = vmatpush1.msra.mxu0 %v3465_v11  ;;  %v1604_v47 = vsel %vm1425_vm2, 1.0, %v4358_v6  ;;  %vm1549_vm6 = vmand %vm3592_vm15, %vm4264_vm12 }
 0x35f   :  { %v1668_v51 = vmul.f32 %v1660_v49, %v1656_v42  ;;  %v3616_v4 = vmul.f32 %v1441_v48, %v1412_v62  ;;  %v1708_v23 = vmul.f32 %v1700_v22, %v1412_v62  ;;  %1895 = vmatprep.subr.mxu0 %v1732_v25  ;;  %vm1750_vm3 = vmand %vm3603_vm14, %vm1540_vm13  ;;  %v1557_v2 = vsel %vm1549_vm6, 1.0, %v4358_v6  ;;  %v4430_v62 = vld [vmem:[#allocation12_spill] sm:$0xff] }
 0x360   :  { %1896 = vmatpush1.msra.mxu0 %v3469_v60  ;;  %v1757_v60 = vsel %vm3611_vm1, 1.0, %v4358_v6  ;;  %v1758_v13 = vsel %vm1750_vm3, 1.0, %v4358_v6  ;;  %vm3672_vm3 = vmand %vm3569_vm10, %vm1425_vm2  ;;  %v1726_v48 = vsel %vm3603_vm14, 1.0, %v4358_v6  ;;  %vm3724_vm1 = vcmp.le.s32.totalorder %v1373_v43, 14 }
 0x361   :  { %v3630_v11 = vpop.permute.xlu0 %1581  ;;  %v3632_v44 = vpop.permute.xlu1 %1520  ;;  %1897 = vmatprep.subr.mxu0 %v1708_v23  ;;  %vm1435_vm2 = vmand %vm3592_vm15, %vm4263_vm9  ;;  %v1379_v8 = vand.u32 63, %v4430_v62 }
 0x362   :  { %v1599_v37 = vsel %vm4260_vm8, %v1580_v30, %v3630_v11  ;;  %1898 = vmatpush1.msra.mxu0 %v1707_v9  ;;  %vm1426_vm8 = vcmp.ge.s32.totalorder %v3551_v16, 1  ;;  %v1491_v30 = vsel %vm3581_vm7, 1.0, %v4358_v6 }
 0x363   :  { %v3642_v34 = vmul.f32 %v1604_v47, %v1599_v37  ;;  %1899 = vmatprep.subr.mxu0 %v1668_v51  ;;  %vm3687_vm6 = vmand %vm3581_vm7, %vm1426_vm8  ;;  %vm3714_vm7 = vcmp.ge.s32.totalorder %v1366_v45, 1  ;;  %v1701_v51 = vsel %vm3672_vm3, 1.0, %v4358_v6  ;;  %v1443_v47 = vsel %vm1435_vm2, 1.0, %v4358_v6 }
 0x364   :  { %1900 = vmatpush1.msra.mxu0 %v3510_v38  ;;  %vm1694_vm10 = vmand %vm3603_vm14, %vm1426_vm8  ;;  %v1442_v23 = vsel %vm3687_vm6, 1.0, %v4358_v6  ;;  %vm3789_vm2 = vcmp.le.s32.totalorder %v1370_v0, 14 }
 0x365   :  { %v1519_v9 = vpop.permute.xlu0 %1518  ;;  %v1470_v12 = vpop.permute.xlu1 %1469  ;;  %1901 = vmatprep.subr.mxu0 %v3326_v10  ;;  %v3677_v10 = vshra.s32 %v1381_v59, 1  ;;  %v1702_v37 = vsel %vm1694_vm10, 1.0, %v4358_v6  ;;  %vm3743_vm14 = vmand %vm3714_vm7, %vm1537_vm4  ;;  %vm4434_vm4 = vcmp.lt.s32.totalorder %v2504_v21, 66  ;;  %vm4440_vm10 = vcmp.lt.s32.totalorder %v2504_v21, 126 }
 0x366   :  { %v1532_v38 = vsel %vm4261_vm5, %v1519_v9, %v3632_v44  ;;  %v1533_v63 = vsel %vm4261_vm5, %v1517_v5, %v1519_v9  ;;  %v1484_v57 = vsel %vm4265_vm0, %v1468_v14, %v1470_v12  ;;  %1902 = vmatpush1.msra.mxu0 %v3340_v15  ;;  %v1661_v9 = vsel %vm1539_vm11, 1.0, %v4358_v6  ;;  %vm4435_vm6 = vmmov %vm4434_vm4 }
 0x367   :  { %v3679_v26 = vmul.f32 %v1556_v29, %v1533_v63  ;;  %v3681_v49 = vmul.f32 %v1557_v2, %v1532_v38  ;;  %v1765_v5 = vmul.f32 %v1757_v60, %v1533_v63  ;;  %v1766_v25 = vmul.f32 %v1758_v13, %v1532_v38  ;;  %1903 = vmatprep.subr.mxu0 %v3532_v31  ;;  %v4433_v60 = vld [vmem:[#allocation13_spill] sm:$0xff] }
 0x368   :  { %v3692_v35 = vmul.f32 %v1491_v30, %v1484_v57  ;;  %v1733_v15 = vmul.f32 %v1725_v54, %v1484_v57  ;;  %vm4267_vm15 = vcmp.le.s32.totalorder %v3677_v10, 14  ;;  %v1380_v29 = vand.u32 63, %v4433_v60 }
 0x369   :  { %v3704_v22 = vpop.permute.xlu0 %1471  ;;  %v3706_v17 = vpop.permute.xlu1 %1398  ;;  %1970 = vmatprep.subr.mxu1 %v1766_v25  ;;  %vm1754_vm3 = vmand %vm3724_vm1, %vm4267_vm15  ;;  %v1371_v30 = vshra.s32 %v4430_v62, 6  ;;  %v3767_v38 = vshra.s32 %v1379_v8, 1  ;;  %v1553_v25 = vsel %vm3743_vm14, 1.0, %v4358_v6  ;;  %vm4262_vm11 = vcmp.ge.s32.totalorder %v3677_v10, 1 }
 0x36a   :  { %v1483_v32 = vsel %vm4265_vm0, %v1470_v12, %v3704_v22  ;;  %1971 = vmatpush1.msra.mxu1 %v1765_v5  ;;  %v1762_v14 = vsel %vm1754_vm3, 1.0, %v4358_v6  ;;  %vm4441_vm14 = vmmov %vm4440_vm10 }
 0x36b   :  { %v3729_v50 = vmul.f32 %v1492_v52, %v1483_v32  ;;  %v1734_v45 = vmul.f32 %v1726_v48, %v1483_v32  ;;  %v3778_v52 = vshra.s32 %v1380_v29, 1  ;;  %vm3783_vm13 = vcmp.ge.s32.totalorder %v1371_v30, 1  ;;  %v4114_v32 = vld [vmem:[%s4192_s2 + $0x8] sm:$0xff] }
 0x36c   :  { %vm1542_vm3 = vcmp.le.s32.totalorder %v3767_v38, 14  ;;  %vm3867_vm0 = vcmp.le.s32.totalorder %v1371_v30, 14  ;;  %v1488_v30 = vsel %vm3714_vm7, 1.0, %v4358_v6 }
 0x36d   :  { %v1397_v2 = vpop.permute.xlu0 %1396  ;;  %v3748_v13 = vpop.permute.xlu1 %1642  ;;  %1972 = vmatprep.subr.mxu1 %v1734_v45 }
 0x36e   :  { %v1410_v54 = vsel %vm4434_vm4, %v1397_v2, %v3706_v17  ;;  %v1411_v12 = vsel %vm4435_vm6, %v3588_v58, %v1397_v2  ;;  %1973 = vmatpush1.msra.mxu1 %v1733_v15  ;;  %v1372_v58 = vshra.s32 %v4433_v60, 6  ;;  %vm4442_vm4 = vcmp.ge.s32.totalorder %v3412_v1, 1 }
 0x36f   :  { %v3769_v63 = vmul.f32 %v1442_v23, %v1411_v12  ;;  %v3771_v57 = vmul.f32 %v1443_v47, %v1410_v54  ;;  %v1709_v19 = vmul.f32 %v1701_v51, %v1411_v12  ;;  %v1710_v5 = vmul.f32 %v1702_v37, %v1410_v54  ;;  %vm3810_vm6 = vmand %vm3714_vm7, %vm4442_vm4 }
 0x370   :  { %vm3913_vm7 = vmand %vm3867_vm0, %vm1542_vm3  ;;  %v1728_v60 = vsel %vm3867_vm0, 1.0, %v4358_v6 }
 0x371   :  { %v1641_v48 = vpop.permute.xlu0 %1640  ;;  %v3780_v15 = vpop.permute.xlu1 %1526  ;;  %1974 = vmatprep.subr.mxu1 %v1710_v5  ;;  %v1439_v5 = vsel %vm3810_vm6, 1.0, %v4358_v6  ;;  %vm4469_vm6 = vcmp.lt.s32.totalorder %v2504_v21, 66 }
 0x372   :  { %v1654_v8 = vsel %vm4440_vm10, %v1641_v48, %v3748_v13  ;;  %v1655_v45 = vsel %vm4441_vm14, %v3586_v46, %v1641_v48  ;;  %v1536_v51 = vsel %vm4261_vm5, %v3780_v15, %v3448_v56  ;;  %1975 = vmatpush1.msra.mxu1 %v1709_v19  ;;  %vm4445_vm10 = vmmov %vm4442_vm4  ;;  %v1605_v46 = vsel %vm1426_vm8, 1.0, %v4358_v6 }
 0x373   :  { %v1669_v7 = vmul.f32 %v1661_v9, %v1655_v45  ;;  %v1670_v0 = vmul.f32 %v1662_v20, %v1654_v8  ;;  %v1561_v23 = vmul.f32 %v1553_v25, %v1536_v51  ;;  %v3804_v47 = vmul.f32 %v1762_v14, %v1536_v51  ;;  %vm3824_vm14 = vmand %vm3724_vm1, %vm4262_vm11 }
 0x374   :  { %v1602_v56 = vsel %vm4445_vm10, 1.0, %v4358_v6  ;;  %vm3828_vm4 = vcmp.ge.s32.totalorder %v1372_v58, 1  ;;  %vm4266_vm5 = vcmp.le.s32.totalorder %v3778_v52, 14  ;;  %vm3841_vm8 = vmand %vm3789_vm2, %vm4264_vm12  ;;  %vm3847_vm10 = vcmp.ge.s32.totalorder %v1373_v43, 1 }
 0x375   :  { %v3833_v1 = vpop.permute.xlu0 %1591  ;;  %v3835_v29 = vpop.permute.xlu1 %1583  ;;  %1976 = vmatprep.subr.mxu1 %v1670_v0  ;;  %vm4454_vm11 = vcmp.lt.s32.totalorder %v2504_v21, 2  ;;  %vm3863_vm12 = vmand %vm3783_vm13, %vm1542_vm3  ;;  %v1730_v19 = vsel %vm3724_vm1, 1.0, %v4358_v6  ;;  %v1706_v25 = vsel %vm3824_vm14, 1.0, %v4358_v6  ;;  %vm4468_vm1 = vcmp.lt.s32.totalorder %v2504_v21, 64 }
 0x376   :  { %v1601_v9 = vsel %vm4454_vm11, %v3833_v1, %v3521_v3  ;;  %vm4455_vm9 = vmmov %vm4454_vm11  ;;  %1977 = vmatpush1.msra.mxu1 %v1669_v7  ;;  %vm3879_vm11 = vcmp.le.s32.totalorder %v1372_v58, 14  ;;  %v1759_v48 = vsel %vm3841_vm8, 1.0, %v4358_v6  ;;  %vm4470_vm14 = vcmp.le.s32.totalorder %v3778_v52, 14 }
 0x377   :  { %v1598_v54 = vsel %vm4455_vm9, %v3630_v11, %v3835_v29  ;;  %v1610_v12 = vmul.f32 %v1602_v56, %v1601_v9  ;;  %vm3875_vm9 = vmand %vm3828_vm4, %vm4266_vm5  ;;  %1978 = vmatprep.subr.mxu1 %v3338_v61  ;;  %v1558_v7 = vsel %vm3863_vm12, 1.0, %v4358_v6  ;;  %vm1429_vm8 = vcmp.ge.s32.totalorder %v3778_v52, 1 }
 0x378   :  { %v1613_v3 = vmul.f32 %v1605_v46, %v1598_v54  ;;  %vm3900_vm5 = vmand %vm3847_vm10, %vm4267_vm15  ;;  %1979 = vmatpush1.msra.mxu1 %v3328_v36  ;;  %v1559_v0 = vsel %vm3875_vm9, 1.0, %v4358_v6  ;;  %v1493_v46 = vsel %vm3783_vm13, 1.0, %v4358_v6  ;;  %v1494_v11 = vsel %vm3828_vm4, 1.0, %v4358_v6 }
 0x379   :  { %v3905_v31 = vpop.permute.xlu0 %1477  ;;  %v3907_v42 = vpop.permute.xlu1 %1404  ;;  %1904 = vmatpush1.msra.mxu0 %v1610_v12  ;;  %vm3932_vm15 = vmand %vm3879_vm11, %vm4470_vm14  ;;  %vm4483_vm14 = vcmp.ge.s32.totalorder %v3677_v10, 1 }
 0x37a   :  { %1980 = vmatprep.subr.mxu1 %v1613_v3  ;;  %v1487_v58 = vsel %vm4468_vm1, %v3905_v31, %v3450_v27  ;;  %v1414_v36 = vsel %vm4469_vm6, %v3907_v42, %v3489_v41  ;;  %1905 = vmatprep.subr.mxu0 %v3463_v33  ;;  %vm1428_vm1 = vcmp.ge.s32.totalorder %v3767_v38, 1  ;;  %v1560_v33 = vsel %vm3900_vm5, 1.0, %v4358_v6  ;;  %v1829_v38 = vld [vmem:[#allocation3 + $0x128] sm:$0xff] }
 0x37b   :  { %1981 = vmatpush1.msra.mxu1 %v3642_v34  ;;  %v1496_v27 = vmul.f32 %v1488_v30, %v1487_v58  ;;  %v3939_v41 = vmul.f32 %v1730_v19, %v1487_v58  ;;  %v1447_v45 = vmul.f32 %v1439_v5, %v1414_v36  ;;  %v3941_v51 = vmul.f32 %v1706_v25, %v1414_v36  ;;  %v1868_v19 = vld [vmem:[#allocation3 + $0x260] sm:$0xff] }
 0x37c   :  { %1906 = vmatpush1.msra.mxu0 %v1561_v23  ;;  %1982 = vmatprep.subr.mxu1 %v3679_v26  ;;  %v1760_v23 = vsel %vm3913_vm7, 1.0, %v4358_v6  ;;  %v1761_v37 = vsel %vm3932_vm15, 1.0, %v4358_v6  ;;  %vm4473_vm5 = vcmp.ge.s32.totalorder %v3558_v40, 1  ;;  %vm4476_vm15 = vcmp.lt.s32.totalorder %v2504_v21, 62 }
 0x37d   :  { %1907 = vmatprep.subr.mxu0 %v3467_v24  ;;  %v1523_v34 = vpop.permute.xlu0 %1522  ;;  %v1525_v56 = vpop.permute.xlu1 %1524  ;;  %v1727_v24 = vsel %vm3789_vm2, 1.0, %v4358_v6  ;;  %1983 = vmatpush1.msra.mxu1 %v3575_v28  ;;  %vm3972_vm12 = vmand %vm3789_vm2, %vm4473_vm5  ;;  %vm1872_vm6 = vcmask 654336   ;;  %v1495_v30 = vsel %vm3847_vm10, 1.0, %v4358_v6  ;;  %v1729_v25 = vsel %vm3879_vm11, 1.0, %v4358_v6 }
 0x37e   :  { %1908 = vmatpush1.msra.mxu0 %v1496_v27  ;;  %v1531_v59 = vsel %vm4476_vm15, %v3632_v44, %v1523_v34  ;;  %vm4477_vm9 = vmmov %vm4476_vm15  ;;  %1984 = vmatprep.subr.mxu1 %v3692_v35  ;;  %v1869_v44 = vld [vmem:[#allocation3 + $0x268] sm:$0xff]  ;;  %v1871_v35 = vld [vmem:[#allocation3 + $0x278] sm:$0xff]  ;;  %v1703_v2 = vsel %vm3972_vm12, 1.0, %v4358_v6 }
 0x37f   :  { %v1529_v16 = vsel %vm4477_vm9, %v1525_v56, %v3780_v15  ;;  %vm4478_vm7 = vmmov %vm4477_vm9  ;;  %1909 = vmatprep.subr.mxu0 %v3508_v53  ;;  %v3994_v9 = vmul.f32 %v1558_v7, %v1531_v59  ;;  %v1767_v15 = vmul.f32 %v1759_v48, %v1531_v59  ;;  %1985 = vmatpush1.msra.mxu1 %v3573_v39  ;;  %v4012_v53 = vld [vmem:[%s4192_s2] sm:$0xff] }
 0x380   :  { %v1530_v28 = vsel %vm4478_vm7, %v1523_v34, %v1525_v56  ;;  %vm3988_vm2 = vmand %vm3783_vm13, %vm1428_vm1  ;;  %v3998_v18 = vmul.f32 %v1560_v33, %v1529_v16  ;;  %v1769_v3 = vmul.f32 %v1761_v37, %v1529_v16  ;;  %1910 = vmatpush1.msra.mxu0 %v1447_v45  ;;  %1986 = vmatprep.subr.mxu1 %v3769_v63 }
 0x381   :  { %v3996_v54 = vmul.f32 %v1559_v0, %v1530_v28  ;;  %vm4004_vm13 = vmand %vm3828_vm4, %vm1429_vm8  ;;  %v1768_v12 = vmul.f32 %v1760_v23, %v1530_v28  ;;  %v1474_v5 = vpop.permute.xlu0 %1473  ;;  %v1476_v61 = vpop.permute.xlu1 %1475  ;;  %1987 = vmatpush1.msra.mxu1 %v3616_v4  ;;  %2045 = vmatprep.subr.mxu0 %v1869_v44  ;;  %v1444_v43 = vsel %vm3988_vm2, 1.0, %v4358_v6  ;;  %vm4496_vm2 = vcmp.le.s32.totalorder %v3558_v40, 14 }
 0x382   :  { %vm4024_vm5 = vmand %vm3847_vm10, %vm4483_vm14  ;;  %vm4488_vm10 = vcmp.lt.s32.totalorder %v2504_v21, 64  ;;  %2283 = vmatmul.mubr.msk.f32.vlgmr.msra.gmra.mxu0 %vm1872_vm6, %v4012_v53  ;;  %2122 = vmatprep.subr.mxu1 %v1871_v35  ;;  %v1445_v20 = vsel %vm4004_vm13, 1.0, %v4358_v6  ;;  %v1664_v44 = vsel %vm1542_vm3, 1.0, %v4358_v6  ;;  %vm4497_vm13 = vcmp.lt.s32.totalorder %v2504_v21, 126 }
 0x383   :  { %vm4042_vm4 = vmand %vm3867_vm0, %vm1428_vm1  ;;  %v1482_v14 = vsel %vm4488_vm10, %v3704_v22, %v1474_v5  ;;  %v1870_v22 = vld [vmem:[#allocation3 + $0x270] sm:$0xff]  ;;  %2046 = vmatpush1.msra.mxu0 %v1868_v19  ;;  %v1446_v0 = vsel %vm4024_vm5, 1.0, %v4358_v6  ;;  %2285 = vmatmul.mubr.msk.f32.vlgmr.msra.gmra.mxu1 %vm1872_vm6, %v4012_v53  ;;  %vm4499_vm3 = vcmp.ge.s32.totalorder %v3558_v40, 1  ;;  %vm4500_vm5 = vcmp.lt.s32.totalorder %v2504_v21, 2 }
 0x384   :  { %vm4489_vm15 = vmmov %vm4488_vm10  ;;  %v1735_v48 = vmul.f32 %v1727_v24, %v1482_v14  ;;  %2047 = vmatprep.subr.mxu0 %v1768_v12  ;;  %v1704_v34 = vsel %vm4042_vm4, 1.0, %v4358_v6  ;;  %2123 = vmatpush1.msra.mxu1 %v1870_v22 }
 0x385   :  { %v1480_v58 = vsel %vm4489_vm15, %v1476_v61, %v3905_v31  ;;  %vm4490_vm12 = vmmov %vm4488_vm10  ;;  %v4068_v31 = vmul.f32 %v1493_v46, %v1482_v14  ;;  %v1401_v33 = vpop.permute.xlu0 %1400  ;;  %v1403_v37 = vpop.permute.xlu1 %1402  ;;  %2048 = vmatpush1.msra.mxu0 %v1767_v15  ;;  %2124 = vmatprep.subr.mxu1 %v3804_v47  ;;  %vm4503_vm10 = vcmp.le.s32.totalorder %v3677_v10, 14  ;;  %vm4504_vm15 = vcmp.ge.s32.totalorder %v3677_v10, 1 }
 0x386   :  { %v1481_v36 = vsel %vm4490_vm12, %v1474_v5, %v1476_v61  ;;  %vm4062_vm0 = vmand %vm3879_vm11, %vm1429_vm8  ;;  %v4072_v27 = vmul.f32 %v1495_v30, %v1480_v58  ;;  %v1737_v7 = vmul.f32 %v1729_v25, %v1480_v58  ;;  %vm4493_vm11 = vcmp.lt.s32.totalorder %v2504_v21, 66  ;;  %2125 = vmatpush1.msra.mxu1 %v1769_v3  ;;  %1949 = vmatprep.mubr.f32.mxu0 %v4358_v6  ;;  %v1830_v21 = vld [vmem:[#allocation3 + $0x130] sm:$0xff] }
 0x387   :  { %v4070_v8 = vmul.f32 %v1494_v11, %v1481_v36  ;;  %v1736_v45 = vmul.f32 %v1728_v60, %v1481_v36  ;;  %v1705_v23 = vsel %vm4062_vm0, 1.0, %v4358_v6  ;;  %v1409_v56 = vsel %vm4493_vm11, %v3706_v17, %v1401_v33  ;;  %vm4494_vm9 = vmmov %vm4493_vm11  ;;  %2126 = vmatprep.subr.mxu1 %v3939_v41  ;;  %2284 = vmatmul.mubr.msk.f32.gmra.mxu0 %vm1872_vm6, %v4114_v32  ;;  %v1828_v60 = vld [vmem:[#allocation3 + $0x120] sm:$0xff] }
 0x388   :  { %v1407_v46 = vsel %vm4494_vm9, %v1403_v37, %v3907_v42  ;;  %vm4495_vm7 = vmmov %vm4494_vm9  ;;  %v4097_v26 = vmul.f32 %v1444_v43, %v1409_v56  ;;  %v1711_v59 = vmul.f32 %v1703_v2, %v1409_v56  ;;  %v1663_v42 = vsel %vm4496_vm2, 1.0, %v4358_v6  ;;  %2127 = vmatpush1.msra.mxu1 %v1737_v7  ;;  %2026 = vmatprep.mubr.f32.mxu1 %v4358_v6 }
 0x389   :  { %v1408_v24 = vsel %vm4495_vm7, %v1401_v33, %v1403_v37  ;;  %2049 = vmatprep.subr.mxu0 %v1736_v45  ;;  %v4101_v28 = vmul.f32 %v1446_v0, %v1407_v46  ;;  %v1713_v17 = vmul.f32 %v1705_v23, %v1407_v46  ;;  %v1645_v47 = vpop.permute.xlu0 %1644  ;;  %v1647_v15 = vpop.permute.xlu1 %1646  ;;  %vm4498_vm14 = vmmov %vm4497_vm13  ;;  %2128 = vmatprep.subr.mxu1 %v3941_v51  ;;  %v1606_v11 = vsel %vm4499_vm3, 1.0, %v4358_v6  ;;  %v2211_v33 = vld [vmem:[#allocation4 + $0x40] sm:$0xff]  ;;  %v2205_v23 = vld [vmem:[#allocation4 + $0x10] sm:$0xff] }
 0x38a   :  { %v4099_v16 = vmul.f32 %v1445_v20, %v1408_v24  ;;  %v1712_v62 = vmul.f32 %v1704_v34, %v1408_v24  ;;  %2050 = vmatpush1.msra.mxu0 %v1735_v48  ;;  %v1653_v35 = vsel %vm4497_vm13, %v3748_v13, %v1645_v47  ;;  %v1652_v12 = vsel %vm4498_vm14, %v1645_v47, %v1647_v15  ;;  %vm4501_vm4 = vmmov %vm4500_vm5 }
 0x38b   :  { %v1671_v41 = vmul.f32 %v1663_v42, %v1653_v35  ;;  %v1672_v3 = vmul.f32 %v1664_v44, %v1652_v12  ;;  %2129 = vmatpush1.msra.mxu1 %v1713_v17  ;;  %v1607_v30 = vsel %vm1428_vm1, 1.0, %v4358_v6  ;;  %2097 = vmatprep.mubr.f32.mxu0 %v4358_v6  ;;  %vm4502_vm1 = vcmp.le.s32.totalorder %v3778_v52, 14  ;;  %vm4505_vm12 = vmmov %vm4497_vm13  ;;  %v2207_v35 = vld [vmem:[#allocation4 + $0x20] sm:$0xff]  ;;  %v2214_v12 = vld [vmem:[#allocation4 + $0x58] sm:$0xff] }
 0x38c   :  { %2051 = vmatprep.subr.mxu0 %v1712_v62  ;;  %2286 = vmatmul.mubr.msk.f32.gmra.mxu1 %vm1872_vm6, %v4114_v32  ;;  %v1665_v25 = vsel %vm4502_vm1, 1.0, %v4358_v6  ;;  %v1608_v61 = vsel %vm1429_vm8, 1.0, %v4358_v6  ;;  %v1609_v2 = vsel %vm4504_vm15, 1.0, %v4358_v6  ;;  %vm4506_vm0 = vmmov %vm4505_vm12  ;;  %v2206_v62 = vld [vmem:[#allocation4 + $0x18] sm:$0xff] }
 0x38d   :  { %2052 = vmatpush1.msra.mxu0 %v1711_v59  ;;  %v1586_v13 = vpop.permute.xlu0 %1585  ;;  %v1588_v51 = vpop.permute.xlu1 %1587  ;;  %2174 = vmatprep.mubr.f32.mxu1 %v4358_v6  ;;  %vm4507_vm11 = vmmov %vm4501_vm4 }
 0x38e   :  { %2053 = vmatprep.subr.mxu0 %v1672_v3  ;;  %v1597_v39 = vsel %vm4500_vm5, %v3835_v29, %v1586_v13  ;;  %v1596_v40 = vsel %vm4501_vm4, %v1586_v13, %v1588_v51  ;;  %v1666_v29 = vsel %vm4503_vm10, 1.0, %v4358_v6  ;;  %vm4508_vm8 = vmmov %vm4501_vm4 }
 0x38f   :  { %2054 = vmatpush1.msra.mxu0 %v1671_v41  ;;  %v1614_v19 = vmul.f32 %v1606_v11, %v1597_v39  ;;  %v1615_v5 = vmul.f32 %v1607_v30, %v1596_v40 }
 0x390   :  { %2055 = vmatprep.subr.mxu0 %v1829_v38 }
 0x391   :  { %2056 = vmatpush1.msra.mxu0 %v1828_v60  ;;  %v1649_v63 = vpop.permute.xlu0 %1648  ;;  %v1590_v14 = vpop.permute.xlu1 %1589 }
 0x392   :  { %2057 = vmatprep.subr.mxu0 %v1615_v5  ;;  %v1651_v58 = vsel %vm4505_vm12, %v1647_v15, %v1649_v63  ;;  %v1658_v36 = vsel %vm4506_vm0, %v1649_v63, %v3491_v55  ;;  %v1594_v52 = vsel %vm4507_vm11, %v1590_v14, %v3833_v1  ;;  %v1595_v43 = vsel %vm4508_vm8, %v1588_v51, %v1590_v14  ;;  %v1831_v55 = vld [vmem:[#allocation3 + $0x138] sm:$0xff]  ;;  %v2208_v51 = vld [vmem:[#allocation4 + $0x28] sm:$0xff] }
 0x393   :  { %2058 = vmatpush1.msra.mxu0 %v1614_v19  ;;  %v1673_v10 = vmul.f32 %v1665_v25, %v1651_v58  ;;  %v1674_v4 = vmul.f32 %v1666_v29, %v1658_v36  ;;  %v1616_v22 = vmul.f32 %v1608_v61, %v1595_v43  ;;  %v1617_v48 = vmul.f32 %v1609_v2, %v1594_v52  ;;  %v2215_v19 = vld [vmem:[#allocation4 + $0x60] sm:$0xff]  ;;  %v2216_v14 = vld [vmem:[#allocation4 + $0x68] sm:$0xff]  ;;  %v2209_v36 = vld [vmem:[#allocation4 + $0x30] sm:$0xff] }
 0x394   :  { %2059 = vmatprep.subr.mxu0 %v3994_v9 }
 0x395   :  { %2060 = vmatpush1.msra.mxu0 %v3681_v49  ;;  %2130 = vmatprep.subr.mxu1 %v1674_v4  ;;  %v2210_v4 = vld [vmem:[#allocation4 + $0x38] sm:$0xff] }
 0x396   :  { %2061 = vmatprep.subr.mxu0 %v4068_v31  ;;  %2131 = vmatpush1.msra.mxu1 %v1673_v10  ;;  %v2204_v31 = vld [vmem:[#allocation4 + $0x8] sm:$0xff] }
 0x397   :  { %2062 = vmatpush1.msra.mxu0 %v3729_v50  ;;  %2132 = vmatprep.subr.mxu1 %v1831_v55 }
 0x398   :  { %2063 = vmatprep.subr.mxu0 %v4097_v26  ;;  %2133 = vmatpush1.msra.mxu1 %v1830_v21 }
 0x399   :  { %2064 = vmatpush1.msra.mxu0 %v3771_v57  ;;  %2134 = vmatprep.subr.mxu1 %v1617_v48 }
 0x39a   :  { %2287 = vmatmul.mubr.msk.f32.vlgmr.msra.gmra.mxu0 %vm1872_vm6, %v4012_v53  ;;  %2135 = vmatpush1.msra.mxu1 %v1616_v22 }
 0x39b   :  { %2103 = vmatprep.mubr.f32.mxu0 %v4358_v6  ;;  %2136 = vmatprep.subr.mxu1 %v3998_v18  ;;  %v2203_v18 = vld [vmem:[#allocation4] sm:$0xff] }
 0x39c   :  { %2137 = vmatpush1.msra.mxu1 %v3996_v54 }
 0x39d   :  { %2138 = vmatprep.subr.mxu1 %v4072_v27 }
 0x39e   :  { %2288 = vmatmul.mubr.msk.f32.gmra.mxu0 %vm1872_vm6, %v4114_v32  ;;  %2139 = vmatpush1.msra.mxu1 %v4070_v8 }
 0x39f   :  { %2140 = vmatprep.subr.mxu1 %v4101_v28 }
 0x3a0   :  { %2141 = vmatpush1.msra.mxu1 %v4099_v16  ;;  %v2213_v16 = vld [vmem:[#allocation4 + $0x50] sm:$0xff] }
 0x3a1   :  { %2289 = vmatmul.mubr.msk.f32.vlgmr.msra.gmra.mxu1 %vm1872_vm6, %v4012_v53 }
 0x3a2   :  { %2180 = vmatprep.mubr.f32.mxu1 %v4358_v6  ;;  %v2212_v6 = vld [vmem:[#allocation4 + $0x48] sm:$0xff] }
 0x3a5   :  { %2290 = vmatmul.mubr.msk.f32.gmra.mxu1 %vm1872_vm6, %v4114_v32  ;;  %vm2262_vm6 = vcmask 0  }
 0x442   :  { %v1945_v49 = vpop.f32.mrf.mxu0 }
 0x443   :  { %v2022_v57 = vpop.f32.mrf.mxu1  ;;  %v2187_v9 = vmax.f32 %v1945_v49, 0.0 }
 0x444   :  { %v1947_v50 = vpop.f32.mrf.mxu0  ;;  %v2189_v53 = vmax.f32 %v2022_v57, 0.0 }
 0x445   :  { %v2188_v54 = vmax.f32 %v1947_v50, 0.0  ;;  %v2024_v8 = vpop.f32.mrf.mxu1  ;;  %v2219_v20 = vmul.f32 %v2203_v18, %v2187_v9  ;;  %v2217_v50 = vld [vmem:[#allocation4 + $0x70] sm:$0xff]  ;;  %v2218_v18 = vld [vmem:[#allocation4 + $0x78] sm:$0xff] }
 0x446   :  { %v2221_v26 = vmul.f32 %v2205_v23, %v2189_v53  ;;  %v2190_v59 = vmax.f32 %v2024_v8, 0.0 }
 0x447   :  { %v1951_v1 = vpop.f32.mrf.mxu0  ;;  %v2220_v0 = vmul.f32 %v2204_v31, %v2188_v54 }
 0x448   :  { %v2195_v45 = vmax.f32 %v1951_v1, 0.0  ;;  %v2222_v15 = vmul.f32 %v2206_v62, %v2190_v59 }
 0x449   :  { %v1953_v27 = vpop.f32.mrf.mxu0  ;;  %v2235_v24 = vadd.f32 %v2220_v0, %v2219_v20 }
 0x44a   :  { %v2196_v7 = vmax.f32 %v1953_v27, 0.0  ;;  %v2227_v37 = vmul.f32 %v2211_v33, %v2195_v45 }
 0x44b   :  { %v2236_v47 = vadd.f32 %v2235_v24, %v2221_v26  ;;  %v2260_v24 = vld [vmem:[%s4192_s2 + $0x18] sm:$0x1] }
 0x44c   :  { %v2028_v34 = vpop.f32.mrf.mxu1  ;;  %v2228_v56 = vmul.f32 %v2212_v6, %v2196_v7 }
 0x44d   :  { %v2197_v46 = vmax.f32 %v2028_v34, 0.0  ;;  %v2237_v40 = vadd.f32 %v2236_v47, %v2222_v15 }
 0x44e   :  { %v2030_v28 = vpop.f32.mrf.mxu1  ;;  %v2244_v17 = vadd.f32 %v2228_v56, %v2227_v37 }
 0x44f   :  { %v2229_v42 = vmul.f32 %v2213_v16, %v2197_v46  ;;  %v2198_v44 = vmax.f32 %v2030_v28, 0.0 }
 0x451   :  { %v2245_v30 = vadd.f32 %v2244_v17, %v2229_v42  ;;  %v2230_v39 = vmul.f32 %v2214_v12, %v2198_v44 }
 0x453   :  { %v2246_v61 = vadd.f32 %v2245_v30, %v2230_v39 }
 0x45a   :  { %v2099_v32 = vpop.f32.mrf.mxu0 }
 0x45b   :  { %v2191_v41 = vmax.f32 %v2099_v32, 0.0 }
 0x45c   :  { %v2101_v3 = vpop.f32.mrf.mxu0 }
 0x45d   :  { %v2223_v11 = vmul.f32 %v2207_v35, %v2191_v41  ;;  %v2192_v13 = vmax.f32 %v2101_v3, 0.0 }
 0x45e   :  { %v2105_v38 = vpop.f32.mrf.mxu0 }
 0x45f   :  { %v2199_v5 = vmax.f32 %v2105_v38, 0.0  ;;  %v2238_v60 = vadd.f32 %v2237_v40, %v2223_v11  ;;  %v2224_v25 = vmul.f32 %v2208_v51, %v2192_v13 }
 0x460   :  { %v2107_v29 = vpop.f32.mrf.mxu0 }
 0x461   :  { %v2231_v2 = vmul.f32 %v2215_v19, %v2199_v5  ;;  %v2200_v63 = vmax.f32 %v2107_v29, 0.0  ;;  %v2176_v58 = vpop.f32.mrf.mxu1  ;;  %v2239_v43 = vadd.f32 %v2238_v60, %v2224_v25 }
 0x462   :  { %v2193_v52 = vmax.f32 %v2176_v58, 0.0 }
 0x463   :  { %v2178_v10 = vpop.f32.mrf.mxu1  ;;  %v2247_v22 = vadd.f32 %v2246_v61, %v2231_v2  ;;  %v2232_v48 = vmul.f32 %v2216_v14, %v2200_v63 }
 0x464   :  { %v2225_v55 = vmul.f32 %v2209_v36, %v2193_v52  ;;  %v2194_v21 = vmax.f32 %v2178_v10, 0.0 }
 0x465   :  { %v2182_v49 = vpop.f32.mrf.mxu1  ;;  %v2248_v31 = vadd.f32 %v2247_v22, %v2232_v48 }
 0x466   :  { %v2240_v57 = vadd.f32 %v2239_v43, %v2225_v55  ;;  %v2226_v1 = vmul.f32 %v2210_v4, %v2194_v21  ;;  %v2201_v9 = vmax.f32 %v2182_v49, 0.0 }
 0x467   :  { %v2184_v54 = vpop.f32.mrf.mxu1 }
 0x468   :  { %v2233_v8 = vmul.f32 %v2217_v50, %v2201_v9  ;;  %v2202_v27 = vmax.f32 %v2184_v54, 0.0  ;;  %v2241_v45 = vadd.f32 %v2240_v57, %v2226_v1 }
 0x46a   :  { %v2249_v7 = vadd.f32 %v2248_v31, %v2233_v8  ;;  %v2234_v20 = vmul.f32 %v2218_v18, %v2202_v27  ;;  %2242 = vadd.xlane.f32.xlu0 %v2241_v45 }
 0x46c   :  { %v2250_v0 = vadd.f32 %v2249_v7, %v2234_v20 }
 0x46e   :  { %2251 = vadd.xlane.f32.xlu1 %v2250_v0 }
 0x4f3   :  { %v2243_v53 = vpop.xlane.xlu0 %2242 }
 0x4f7   :  { %v2252_v33 = vpop.xlane.xlu1 %2251 }
 0x4f8   :  { %v2253_v6 = vadd.f32 %v2252_v33, %v2243_v53 }
 0x4fa   :  { %v2254_v34 = vrot.slane %v2253_v6, 4 }
 0x4fc   :  { %v2255_v23 = vadd.f32 %v2254_v34, %v2253_v6 }
 0x4fe   :  { %v2256_v37 = vrot.slane %v2255_v23, 2 }
 0x500   :  { %v2257_v56 = vadd.f32 %v2256_v37, %v2255_v23 }
 0x502   :  { %v2258_v46 = vrot.slane %v2257_v56, 1 }
 0x504   :  { %v2259_v26 = vadd.f32 %v2258_v46, %v2257_v56 }
 0x506   :  { %v2261_v59 = vadd.f32 %v2260_v24, %v2259_v26 }
 0x508   :  { %2263 = vst.msk [vmem:[#allocation7] sm:$0x1] %vm2262_vm6, %v2261_v59 }
 0x509   :  { %2341 = shalt.err (!%p2338_p9)
}
 0x50a   :  { %2273 = dma.vmem_to_hbm [thread:$0]  %s2271_s13, 16, %s4193_s3, [#allocation6]  }
 0x50b   :  { %2352 = dma.done.wait [#allocation6], 16  }
 0x50c   :  { %2353 = vsyncadd [#allocation6], 4294967280 }
 0x50d   :  { %2277 = vsyncpa [#allocation5], 1 }
 0x50e   :  { %2278 = vsyncpa [#allocation6], 1 }

</bundles_post_ra>
